<compile_context>
chip_gen: v6e
topology: v6e:2x2x1
jax: 0.10.0
libtpu: 0.0.40
codegen_flags: <defaults>
</compile_context>

<pallas_src>
import jax
import jax.numpy as jnp
from jax.experimental import pallas as pl
from jax.experimental.pallas import tpu as pltpu


# ------------------------------------------------------------------ helpers --

def _lstm_cell(x, h, c, w_ih, w_hh, b):
    """PyTorch LSTMCell math, gate order i, f, g, o.

    x/h/c arrive in f32; the two matmuls run with bf16 operands and f32
    accumulation on the MXU; all elementwise / EUP math stays in f32.
    """
    H = c.shape[-1]
    mdt = w_ih.dtype                      # bf16 compute dtype for the MXU
    gates = (jnp.dot(x.astype(mdt), w_ih, preferred_element_type=jnp.float32)
             + jnp.dot(h.astype(mdt), w_hh, preferred_element_type=jnp.float32)
             + b)                         # (B, 4H) f32
    i_g = jax.nn.sigmoid(gates[:, 0 * H:1 * H])
    f_g = jax.nn.sigmoid(gates[:, 1 * H:2 * H])
    g_g = jnp.tanh(gates[:, 2 * H:3 * H])
    o_g = jax.nn.sigmoid(gates[:, 3 * H:4 * H])
    c_new = f_g * c + i_g * g_g
    h_new = o_g * jnp.tanh(c_new)
    return h_new, c_new


# ------------------------------------------------------------------ kernels --

def encoder_kernel(src_oh_ref, emb_ref, wih_ref, whh_ref, b_ref,
                   h_ref, c_ref):
    """One grid step == one encoder timestep.  h/c carried in resident outputs."""
    t = pl.program_id(0)

    @pl.when(t == 0)
    def _():
        h_ref[...] = jnp.zeros_like(h_ref)
        c_ref[...] = jnp.zeros_like(c_ref)

    # In-kernel embedding lookup as a one-hot matmul (MXU).
    x = jnp.dot(src_oh_ref[...], emb_ref[...],
                preferred_element_type=jnp.float32)          # (B, E) f32

    h_new, c_new = _lstm_cell(x, h_ref[...], c_ref[...],
                              wih_ref[...], whh_ref[...], b_ref[...])
    h_ref[...] = h_new
    c_ref[...] = c_new


def decoder_kernel(tf_ref,                                   # scalar prefetch (SMEM)
                   teach_oh_ref, emb_ref, wih_ref, whh_ref, b_ref,
                   wfc_ref, bfc_ref, h0_ref, c0_ref,
                   out_ref,
                   h_scr, c_scr, guess_scr):
    """One grid step == one decoder timestep (LSTM cell + vocab projection +
    in-kernel argmax / teacher-forcing selection)."""
    s = pl.program_id(0)
    B, V = out_ref.shape

    @pl.when(s == 0)
    def _():
        h_scr[...] = h0_ref[...]
        c_scr[...] = c0_ref[...]
        guess_scr[...] = jnp.zeros_like(guess_scr)

    # Teacher forcing: blend between the teacher token one-hot and the previous
    # step's greedy one-hot (tf flag forced to 1 at s==0 -> x = target[0]).
    tf_f = (tf_ref[s] != 0).astype(jnp.float32)
    x_oh = tf_f * teach_oh_ref[...] + (1.0 - tf_f) * guess_scr[...]   # (B, V) f32

    # Embedding gather as one-hot matmul against the resident table.
    x = jnp.dot(x_oh.astype(emb_ref.dtype), emb_ref[...],
                preferred_element_type=jnp.float32)                   # (B, E) f32

    h_new, c_new = _lstm_cell(x, h_scr[...], c_scr[...],
                              wih_ref[...], whh_ref[...], b_ref[...])
    h_scr[...] = h_new
    c_scr[...] = c_new

    logits = (jnp.dot(h_new.astype(wfc_ref.dtype), wfc_ref[...],
                      preferred_element_type=jnp.float32)
              + bfc_ref[...])                                         # (B, V) f32
    out_ref[...] = logits

    # Greedy token for the next step: first-max argmax as a one-hot (all on
    # VPU/XLU: max-reduce, compare, min-reduce), stays resident in VMEM.
    lane = jax.lax.broadcasted_iota(jnp.int32, (B, V), 1).astype(jnp.float32)
    m = jnp.max(logits, axis=-1, keepdims=True)
    idx = jnp.min(jnp.where(logits == m, lane, float(V)),
                  axis=-1, keepdims=True)
    guess_scr[...] = (lane == idx).astype(guess_scr.dtype)


# ----------------------------------------------------------------- wrappers --

def run_encoder(source, enc_emb, w_ih, w_hh, b):
    """source: (src_len, batch) int32 -> (h, c) each (batch, hidden) f32."""
    T, B = source.shape
    Vs, E = enc_emb.shape
    H = w_hh.shape[0]
    mdt = jnp.bfloat16
    src_oh = jax.nn.one_hot(source, Vs, dtype=mdt)        # (T, B, Vs), tiny

    return pl.pallas_call(
        encoder_kernel,
        out_shape=(jax.ShapeDtypeStruct((B, H), jnp.float32),
                   jax.ShapeDtypeStruct((B, H), jnp.float32)),
        grid_spec=pltpu.PrefetchScalarGridSpec(
            num_scalar_prefetch=0,
            grid=(T,),
            in_specs=[
                pl.BlockSpec((None, B, Vs), lambda t: (t, 0, 0)),   # per-step one-hot
                pl.BlockSpec((Vs, E), lambda t: (0, 0)),            # resident emb
                pl.BlockSpec((E, 4 * H), lambda t: (0, 0)),         # resident weights
                pl.BlockSpec((H, 4 * H), lambda t: (0, 0)),
                pl.BlockSpec((1, 4 * H), lambda t: (0, 0)),
            ],
            out_specs=[pl.BlockSpec((B, H), lambda t: (0, 0)),      # resident h carry
                       pl.BlockSpec((B, H), lambda t: (0, 0))],     # resident c carry
        ),
        compiler_params=pltpu.CompilerParams(
            dimension_semantics=("arbitrary",)),
    )(src_oh, enc_emb.astype(mdt), w_ih.astype(mdt), w_hh.astype(mdt), b)


def run_decoder(use_teacher, teacher_oh, h0, c0,
                dec_emb, w_ih, w_hh, b, w_fc, b_fc):
    """Fused autoregressive decoder loop.

    use_teacher: (tgt_len-1,) int32   per-step teacher-forcing flags (SMEM)
    teacher_oh : (tgt_len-1, B, V) f32 one-hot of target[:-1]
    Returns logits (tgt_len-1, B, V) f32 (rows 1..tgt_len-1 of outputs).
    """
    S, B, V = teacher_oh.shape
    E = dec_emb.shape[1]
    H = w_hh.shape[0]
    mdt = jnp.bfloat16

    return pl.pallas_call(
        decoder_kernel,
        out_shape=jax.ShapeDtypeStruct((S, B, V), jnp.float32),
        grid_spec=pltpu.PrefetchScalarGridSpec(
            num_scalar_prefetch=1,
            grid=(S,),
            in_specs=[
                pl.BlockSpec((None, B, V), lambda s, tf: (s, 0, 0)),  # teacher one-hot
                pl.BlockSpec((V, E), lambda s, tf: (0, 0)),           # resident emb
                pl.BlockSpec((E, 4 * H), lambda s, tf: (0, 0)),
                pl.BlockSpec((H, 4 * H), lambda s, tf: (0, 0)),
                pl.BlockSpec((1, 4 * H), lambda s, tf: (0, 0)),
                pl.BlockSpec((H, V), lambda s, tf: (0, 0)),           # resident fc W
                pl.BlockSpec((1, V), lambda s, tf: (0, 0)),
                pl.BlockSpec((B, H), lambda s, tf: (0, 0)),           # h0
                pl.BlockSpec((B, H), lambda s, tf: (0, 0)),           # c0
            ],
            out_specs=pl.BlockSpec((None, B, V), lambda s, tf: (s, 0, 0)),
            scratch_shapes=[
                pltpu.VMEM((B, H), jnp.float32),   # h carry
                pltpu.VMEM((B, H), jnp.float32),   # c carry
                pltpu.VMEM((B, V), jnp.float32),   # previous greedy one-hot
            ],
        ),
        compiler_params=pltpu.CompilerParams(
            dimension_semantics=("arbitrary",)),
    )(use_teacher, teacher_oh,
      dec_emb.astype(mdt), w_ih.astype(mdt), w_hh.astype(mdt), b,
      w_fc.astype(mdt), b_fc, h0, c0)


def seq2seq_forward(params, source, target, teacher_force_ratio, tf_key):
    """source: (src_len, batch) int32, target: (tgt_len, batch) int32.

    Returns outputs: (tgt_len, batch, target_vocab) f32 with outputs[0] == 0.
    """
    tgt_len, batch = target.shape
    V = params["dec_fc_w"].shape[-1]

    hidden, cell = run_encoder(source, params["enc_emb"], params["enc_w_ih"],
                               params["enc_w_hh"], params["enc_b"])

    # Per-step teacher-forcing flags (one coin flip per step for the whole
    # batch, like the reference). Step 0 always consumes target[0].
    # TODO(synk): python random.random() replaced by deterministic jax.random.
    flips = jax.random.uniform(tf_key, (tgt_len - 1,)) < teacher_force_ratio
    use_teacher = flips.at[0].set(True).astype(jnp.int32)

    teacher_oh = jax.nn.one_hot(target[:-1], V, dtype=jnp.float32)  # (T-1, B, V)

    logits = run_decoder(use_teacher, teacher_oh, hidden, cell,
                         params["dec_emb"], params["dec_w_ih"],
                         params["dec_w_hh"], params["dec_b"],
                         params["dec_fc_w"], params["dec_fc_b"])    # (T-1, B, V)

    zeros0 = jnp.zeros((1, batch, V), jnp.float32)
    return jnp.concatenate([zeros0, logits], axis=0)                 # (T, B, V)


# --------------------------------------------------------------------- main --

def make_params(key, src_vocab, tgt_vocab, emb, hidden):
    ks = jax.random.split(key, 10)
    s = 0.1
    return {
        "enc_emb":  jax.random.normal(ks[0], (src_vocab, emb), jnp.float32) * s,
        "enc_w_ih": jax.random.normal(ks[1], (emb, 4 * hidden), jnp.float32) * s,
        "enc_w_hh": jax.random.normal(ks[2], (hidden, 4 * hidden), jnp.float32) * s,
        "enc_b":    jax.random.normal(ks[3], (1, 4 * hidden), jnp.float32) * s,
        "dec_emb":  jax.random.normal(ks[4], (tgt_vocab, emb), jnp.float32) * s,
        "dec_w_ih": jax.random.normal(ks[5], (emb, 4 * hidden), jnp.float32) * s,
        "dec_w_hh": jax.random.normal(ks[6], (hidden, 4 * hidden), jnp.float32) * s,
        "dec_b":    jax.random.normal(ks[7], (1, 4 * hidden), jnp.float32) * s,
        "dec_fc_w": jax.random.normal(ks[8], (hidden, tgt_vocab), jnp.float32) * s,
        "dec_fc_b": jax.random.normal(ks[9], (1, tgt_vocab), jnp.float32) * s,
    }


if __name__ == "__main__":
    # Lane-aligned small shapes: E = H = 128, vocabs = 128 (multiples of 128
    # keep gate slices and vocab logits lane-dense).
    SRC_VOCAB, TGT_VOCAB = 128, 128
    EMB, HIDDEN = 128, 128
    SRC_LEN, TGT_LEN, BATCH = 8, 8, 8

    key = jax.random.PRNGKey(0)
    k_p, k_s, k_t, k_tf = jax.random.split(key, 4)
    params = make_params(k_p, SRC_VOCAB, TGT_VOCAB, EMB, HIDDEN)

    source = jax.random.randint(k_s, (SRC_LEN, BATCH), 0, SRC_VOCAB, jnp.int32)
    target = jax.random.randint(k_t, (TGT_LEN, BATCH), 0, TGT_VOCAB, jnp.int32)

    fwd = jax.jit(seq2seq_forward)
    outputs = fwd(params, source, target, 0.5, k_tf)
    outputs = jax.block_until_ready(outputs)

    assert outputs.shape == (TGT_LEN, BATCH, TGT_VOCAB)
    assert bool(jnp.all(outputs[0] == 0.0))
    assert bool(jnp.all(jnp.isfinite(outputs)))
    print("KERNEL_OK")
</pallas_src>

<mosaic_0001>
module attributes {stable_mosaic.version = 11 : i64} {
  func.func @encoder_kernel(%arg0: i32, %arg1: memref<1x8x128xbf16, #tpu.memory_space<vmem>>, %arg2: memref<128x128xbf16, #tpu.memory_space<vmem>>, %arg3: memref<128x512xbf16, #tpu.memory_space<vmem>>, %arg4: memref<128x512xbf16, #tpu.memory_space<vmem>>, %arg5: memref<1x512xf32, #tpu.memory_space<vmem>>, %arg6: memref<8x128xf32, #tpu.memory_space<vmem>>, %arg7: memref<8x128xf32, #tpu.memory_space<vmem>>) attributes {dimension_semantics = [#tpu.dimension_semantics<arbitrary>], iteration_bounds = array<i64: 8>, scalar_prefetch = 0 : i64, scratch_operands = 0 : i64, tpu.core_type = #tpu.core_type<tc>, window_params = [{transform_indices = @transform_0, window_bounds = array<i64: 1, 8, 128>}, {pipeline_mode = #tpu.pipeline_mode<synchronous>, transform_indices = @transform_1, window_bounds = array<i64: 128, 128>}, {pipeline_mode = #tpu.pipeline_mode<synchronous>, transform_indices = @transform_2, window_bounds = array<i64: 128, 512>}, {pipeline_mode = #tpu.pipeline_mode<synchronous>, transform_indices = @transform_3, window_bounds = array<i64: 128, 512>}, {pipeline_mode = #tpu.pipeline_mode<synchronous>, transform_indices = @transform_4, window_bounds = array<i64: 1, 512>}, {pipeline_mode = #tpu.pipeline_mode<synchronous>, transform_indices = @transform_5, window_bounds = array<i64: 8, 128>}, {pipeline_mode = #tpu.pipeline_mode<synchronous>, transform_indices = @transform_6, window_bounds = array<i64: 8, 128>}]} {
    %c0_i32 = arith.constant 0 : i32
    %0 = arith.cmpi eq, %arg0, %c0_i32 : i32
    %1 = arith.extui %0 : i1 to i32
    %c0_i32_0 = arith.constant 0 : i32
    %2 = arith.cmpi ne, %1, %c0_i32_0 : i32
    scf.if %2 {
      %cst_24 = arith.constant 0.000000e+00 : f32
      %46 = vector.broadcast %cst_24 : f32 to vector<8x128xf32>
      %c0_25 = arith.constant 0 : index
      %c0_26 = arith.constant 0 : index
      %47 = vector.load %arg6[%c0_25, %c0_26] : memref<8x128xf32, #tpu.memory_space<vmem>>, vector<8x128xf32>
      tpu.vector_store %arg6[%c0_25, %c0_26], %46 {strides = array<i32>} : memref<8x128xf32, #tpu.memory_space<vmem>>, vector<8x128xf32>,
      %cst_27 = arith.constant 0.000000e+00 : f32
      %48 = vector.broadcast %cst_27 : f32 to vector<8x128xf32>
      %c0_28 = arith.constant 0 : index
      %c0_29 = arith.constant 0 : index
      %49 = vector.load %arg7[%c0_28, %c0_29] : memref<8x128xf32, #tpu.memory_space<vmem>>, vector<8x128xf32>
      tpu.vector_store %arg7[%c0_28, %c0_29], %48 {strides = array<i32>} : memref<8x128xf32, #tpu.memory_space<vmem>>, vector<8x128xf32>,
    } else {
    }
    %c0 = arith.constant 0 : index
    %c0_1 = arith.constant 0 : index
    %c0_2 = arith.constant 0 : index
    %3 = vector.load %arg1[%c0, %c0_1, %c0_2] : memref<1x8x128xbf16, #tpu.memory_space<vmem>>, vector<1x8x128xbf16>
    %4 = vector.shape_cast %3 : vector<1x8x128xbf16> to vector<8x128xbf16>
    %c0_3 = arith.constant 0 : index
    %c0_4 = arith.constant 0 : index
    %5 = vector.load %arg2[%c0_3, %c0_4] : memref<128x128xbf16, #tpu.memory_space<vmem>>, vector<128x128xbf16>
    %cst = arith.constant dense<0.000000e+00> : vector<8x128xf32>
    %6 = tpu.matmul %4, %5, %cst {dimension_numbers = #tpu.dot_dimension_numbers<[1], [0], [0], [1], [0, 0, 1, 1], [], []>} : vector<8x128xbf16>, vector<128x128xbf16>, vector<8x128xf32> -> vector<8x128xf32>
    %c0_5 = arith.constant 0 : index
    %c0_6 = arith.constant 0 : index
    %7 = vector.load %arg6[%c0_5, %c0_6] : memref<8x128xf32, #tpu.memory_space<vmem>>, vector<8x128xf32>
    %c0_7 = arith.constant 0 : index
    %c0_8 = arith.constant 0 : index
    %8 = vector.load %arg7[%c0_7, %c0_8] : memref<8x128xf32, #tpu.memory_space<vmem>>, vector<8x128xf32>
    %c0_9 = arith.constant 0 : index
    %c0_10 = arith.constant 0 : index
    %9 = vector.load %arg3[%c0_9, %c0_10] : memref<128x512xbf16, #tpu.memory_space<vmem>>, vector<128x512xbf16>
    %c0_11 = arith.constant 0 : index
    %c0_12 = arith.constant 0 : index
    %10 = vector.load %arg4[%c0_11, %c0_12] : memref<128x512xbf16, #tpu.memory_space<vmem>>, vector<128x512xbf16>
    %c0_13 = arith.constant 0 : index
    %c0_14 = arith.constant 0 : index
    %11 = vector.load %arg5[%c0_13, %c0_14] : memref<1x512xf32, #tpu.memory_space<vmem>>, vector<1x512xf32>
    %12 = arith.truncf %6 : vector<8x128xf32> to vector<8x128xbf16>
    %cst_15 = arith.constant dense<0.000000e+00> : vector<8x512xf32>
    %13 = tpu.matmul %12, %9, %cst_15 {dimension_numbers = #tpu.dot_dimension_numbers<[1], [0], [0], [1], [0, 0, 1, 1], [], []>} : vector<8x128xbf16>, vector<128x512xbf16>, vector<8x512xf32> -> vector<8x512xf32>
    %14 = arith.truncf %7 : vector<8x128xf32> to vector<8x128xbf16>
    %cst_16 = arith.constant dense<0.000000e+00> : vector<8x512xf32>
    %15 = tpu.matmul %14, %10, %cst_16 {dimension_numbers = #tpu.dot_dimension_numbers<[1], [0], [0], [1], [0, 0, 1, 1], [], []>} : vector<8x128xbf16>, vector<128x512xbf16>, vector<8x512xf32> -> vector<8x512xf32>
    %16 = arith.addf %13, %15 : vector<8x512xf32>
    %17 = vector.broadcast %11 : vector<1x512xf32> to vector<8x512xf32>
    %18 = arith.addf %16, %17 : vector<8x512xf32>
    %19 = vector.extract_strided_slice %18 {offsets = [0, 0], sizes = [8, 128], strides = [1, 1]} : vector<8x512xf32> to vector<8x128xf32>
    %20 = arith.negf %19 : vector<8x128xf32>
    %21 = math.exp %20 : vector<8x128xf32>
    %cst_17 = arith.constant 1.000000e+00 : f32
    %22 = vector.broadcast %cst_17 : f32 to vector<8x128xf32>
    %23 = arith.addf %22, %21 : vector<8x128xf32>
    %24 = arith.divf %22, %23 : vector<8x128xf32>
    %25 = vector.extract_strided_slice %18 {offsets = [0, 128], sizes = [8, 128], strides = [1, 1]} : vector<8x512xf32> to vector<8x128xf32>
    %26 = arith.negf %25 : vector<8x128xf32>
    %27 = math.exp %26 : vector<8x128xf32>
    %cst_18 = arith.constant 1.000000e+00 : f32
    %28 = vector.broadcast %cst_18 : f32 to vector<8x128xf32>
    %29 = arith.addf %28, %27 : vector<8x128xf32>
    %30 = arith.divf %28, %29 : vector<8x128xf32>
    %31 = vector.extract_strided_slice %18 {offsets = [0, 256], sizes = [8, 128], strides = [1, 1]} : vector<8x512xf32> to vector<8x128xf32>
    %32 = math.tanh %31 : vector<8x128xf32>
    %33 = vector.extract_strided_slice %18 {offsets = [0, 384], sizes = [8, 128], strides = [1, 1]} : vector<8x512xf32> to vector<8x128xf32>
    %34 = arith.negf %33 : vector<8x128xf32>
    %35 = math.exp %34 : vector<8x128xf32>
    %cst_19 = arith.constant 1.000000e+00 : f32
    %36 = vector.broadcast %cst_19 : f32 to vector<8x128xf32>
    %37 = arith.addf %36, %35 : vector<8x128xf32>
    %38 = arith.divf %36, %37 : vector<8x128xf32>
    %39 = arith.mulf %30, %8 : vector<8x128xf32>
    %40 = arith.mulf %24, %32 : vector<8x128xf32>
    %41 = arith.addf %39, %40 : vector<8x128xf32>
    %42 = math.tanh %41 : vector<8x128xf32>
    %43 = arith.mulf %38, %42 : vector<8x128xf32>
    %c0_20 = arith.constant 0 : index
    %c0_21 = arith.constant 0 : index
    %44 = vector.load %arg6[%c0_20, %c0_21] : memref<8x128xf32, #tpu.memory_space<vmem>>, vector<8x128xf32>
    tpu.vector_store %arg6[%c0_20, %c0_21], %43 {strides = array<i32>} : memref<8x128xf32, #tpu.memory_space<vmem>>, vector<8x128xf32>,
    %c0_22 = arith.constant 0 : index
    %c0_23 = arith.constant 0 : index
    %45 = vector.load %arg7[%c0_22, %c0_23] : memref<8x128xf32, #tpu.memory_space<vmem>>, vector<8x128xf32>
    tpu.vector_store %arg7[%c0_22, %c0_23], %41 {strides = array<i32>} : memref<8x128xf32, #tpu.memory_space<vmem>>, vector<8x128xf32>,
    return
  }
  func.func @transform_0(%arg0: i32) -> (i32, i32, i32) {
    %c0_i32 = arith.constant 0 : i32
    %c0_i32_0 = arith.constant 0 : i32
    %c0_i32_1 = arith.constant 0 : i32
    return %arg0, %c0_i32, %c0_i32_0 : i32, i32, i32
  }
  func.func @transform_1(%arg0: i32) -> (i32, i32) {
    %c0_i32 = arith.constant 0 : i32
    %c0_i32_0 = arith.constant 0 : i32
    %c0_i32_1 = arith.constant 0 : i32
    return %c0_i32, %c0_i32_0 : i32, i32
  }
  func.func @transform_2(%arg0: i32) -> (i32, i32) {
    %c0_i32 = arith.constant 0 : i32
    %c0_i32_0 = arith.constant 0 : i32
    %c0_i32_1 = arith.constant 0 : i32
    return %c0_i32, %c0_i32_0 : i32, i32
  }
  func.func @transform_3(%arg0: i32) -> (i32, i32) {
    %c0_i32 = arith.constant 0 : i32
    %c0_i32_0 = arith.constant 0 : i32
    %c0_i32_1 = arith.constant 0 : i32
    return %c0_i32, %c0_i32_0 : i32, i32
  }
  func.func @transform_4(%arg0: i32) -> (i32, i32) {
    %c0_i32 = arith.constant 0 : i32
    %c0_i32_0 = arith.constant 0 : i32
    %c0_i32_1 = arith.constant 0 : i32
    return %c0_i32, %c0_i32_0 : i32, i32
  }
  func.func @transform_5(%arg0: i32) -> (i32, i32) {
    %c0_i32 = arith.constant 0 : i32
    %c0_i32_0 = arith.constant 0 : i32
    %c0_i32_1 = arith.constant 0 : i32
    return %c0_i32, %c0_i32_0 : i32, i32
  }
  func.func @transform_6(%arg0: i32) -> (i32, i32) {
    %c0_i32 = arith.constant 0 : i32
    %c0_i32_0 = arith.constant 0 : i32
    %c0_i32_1 = arith.constant 0 : i32
    return %c0_i32, %c0_i32_0 : i32, i32
  }
}

module attributes {stable_mosaic.version = 11 : i64} {
  func.func @decoder_kernel(%arg0: i32, %arg1: memref<7xi32, #tpu.memory_space<smem>>, %arg2: memref<1x8x128xf32, #tpu.memory_space<vmem>>, %arg3: memref<128x128xbf16, #tpu.memory_space<vmem>>, %arg4: memref<128x512xbf16, #tpu.memory_space<vmem>>, %arg5: memref<128x512xbf16, #tpu.memory_space<vmem>>, %arg6: memref<1x512xf32, #tpu.memory_space<vmem>>, %arg7: memref<128x128xbf16, #tpu.memory_space<vmem>>, %arg8: memref<1x128xf32, #tpu.memory_space<vmem>>, %arg9: memref<8x128xf32, #tpu.memory_space<vmem>>, %arg10: memref<8x128xf32, #tpu.memory_space<vmem>>, %arg11: memref<1x8x128xf32, #tpu.memory_space<vmem>>, %arg12: memref<8x128xf32, #tpu.memory_space<vmem>>, %arg13: memref<8x128xf32, #tpu.memory_space<vmem>>, %arg14: memref<8x128xf32, #tpu.memory_space<vmem>>) attributes {dimension_semantics = [#tpu.dimension_semantics<arbitrary>], iteration_bounds = array<i64: 7>, scalar_prefetch = 1 : i64, scratch_operands = 3 : i64, tpu.core_type = #tpu.core_type<tc>, window_params = [{transform_indices = @transform_0, window_bounds = array<i64: 1, 8, 128>}, {pipeline_mode = #tpu.pipeline_mode<synchronous>, transform_indices = @transform_1, window_bounds = array<i64: 128, 128>}, {pipeline_mode = #tpu.pipeline_mode<synchronous>, transform_indices = @transform_2, window_bounds = array<i64: 128, 512>}, {pipeline_mode = #tpu.pipeline_mode<synchronous>, transform_indices = @transform_3, window_bounds = array<i64: 128, 512>}, {pipeline_mode = #tpu.pipeline_mode<synchronous>, transform_indices = @transform_4, window_bounds = array<i64: 1, 512>}, {pipeline_mode = #tpu.pipeline_mode<synchronous>, transform_indices = @transform_5, window_bounds = array<i64: 128, 128>}, {pipeline_mode = #tpu.pipeline_mode<synchronous>, transform_indices = @transform_6, window_bounds = array<i64: 1, 128>}, {pipeline_mode = #tpu.pipeline_mode<synchronous>, transform_indices = @transform_7, window_bounds = array<i64: 8, 128>}, {pipeline_mode = #tpu.pipeline_mode<synchronous>, transform_indices = @transform_8, window_bounds = array<i64: 8, 128>}, {transform_indices = @transform_9, window_bounds = array<i64: 1, 8, 128>}]} {
    %c0_i32 = arith.constant 0 : i32
    %0 = arith.cmpi eq, %arg0, %c0_i32 : i32
    %1 = arith.extui %0 : i1 to i32
    %c0_i32_0 = arith.constant 0 : i32
    %2 = arith.cmpi ne, %1, %c0_i32_0 : i32
    scf.if %2 {
      %c0_41 = arith.constant 0 : index
      %c0_42 = arith.constant 0 : index
      %83 = vector.load %arg9[%c0_41, %c0_42] : memref<8x128xf32, #tpu.memory_space<vmem>>, vector<8x128xf32>
      %c0_43 = arith.constant 0 : index
      %c0_44 = arith.constant 0 : index
      %84 = vector.load %arg12[%c0_43, %c0_44] : memref<8x128xf32, #tpu.memory_space<vmem>>, vector<8x128xf32>
      tpu.vector_store %arg12[%c0_43, %c0_44], %83 {strides = array<i32>} : memref<8x128xf32, #tpu.memory_space<vmem>>, vector<8x128xf32>,
      %c0_45 = arith.constant 0 : index
      %c0_46 = arith.constant 0 : index
      %85 = vector.load %arg10[%c0_45, %c0_46] : memref<8x128xf32, #tpu.memory_space<vmem>>, vector<8x128xf32>
      %c0_47 = arith.constant 0 : index
      %c0_48 = arith.constant 0 : index
      %86 = vector.load %arg13[%c0_47, %c0_48] : memref<8x128xf32, #tpu.memory_space<vmem>>, vector<8x128xf32>
      tpu.vector_store %arg13[%c0_47, %c0_48], %85 {strides = array<i32>} : memref<8x128xf32, #tpu.memory_space<vmem>>, vector<8x128xf32>,
      %cst_49 = arith.constant 0.000000e+00 : f32
      %87 = vector.broadcast %cst_49 : f32 to vector<8x128xf32>
      %c0_50 = arith.constant 0 : index
      %c0_51 = arith.constant 0 : index
      %88 = vector.load %arg14[%c0_50, %c0_51] : memref<8x128xf32, #tpu.memory_space<vmem>>, vector<8x128xf32>
      tpu.vector_store %arg14[%c0_50, %c0_51], %87 {strides = array<i32>} : memref<8x128xf32, #tpu.memory_space<vmem>>, vector<8x128xf32>,
    } else {
    }
    %3 = arith.index_cast %arg0 : i32 to index
    %4 = memref.load %arg1[%3] : memref<7xi32, #tpu.memory_space<smem>>
    %c0_i32_1 = arith.constant 0 : i32
    %5 = arith.cmpi ne, %4, %c0_i32_1 : i32
    %6 = arith.extui %5 : i1 to i32
    %7 = arith.sitofp %6 : i32 to f32
    %c0 = arith.constant 0 : index
    %c0_2 = arith.constant 0 : index
    %c0_3 = arith.constant 0 : index
    %8 = vector.load %arg2[%c0, %c0_2, %c0_3] : memref<1x8x128xf32, #tpu.memory_space<vmem>>, vector<1x8x128xf32>
    %9 = vector.shape_cast %8 : vector<1x8x128xf32> to vector<8x128xf32>
    %10 = vector.broadcast %7 : f32 to vector<8x128xf32>
    %11 = arith.mulf %10, %9 : vector<8x128xf32>
    %cst = arith.constant 1.000000e+00 : f32
    %12 = arith.subf %cst, %7 : f32
    %c0_4 = arith.constant 0 : index
    %c0_5 = arith.constant 0 : index
    %13 = vector.load %arg14[%c0_4, %c0_5] : memref<8x128xf32, #tpu.memory_space<vmem>>, vector<8x128xf32>
    %14 = vector.broadcast %12 : f32 to vector<8x128xf32>
    %15 = arith.mulf %14, %13 : vector<8x128xf32>
    %16 = arith.addf %11, %15 : vector<8x128xf32>
    %17 = arith.truncf %16 : vector<8x128xf32> to vector<8x128xbf16>
    %c0_6 = arith.constant 0 : index
    %c0_7 = arith.constant 0 : index
    %18 = vector.load %arg3[%c0_6, %c0_7] : memref<128x128xbf16, #tpu.memory_space<vmem>>, vector<128x128xbf16>
    %cst_8 = arith.constant dense<0.000000e+00> : vector<8x128xf32>
    %19 = tpu.matmul %17, %18, %cst_8 {dimension_numbers = #tpu.dot_dimension_numbers<[1], [0], [0], [1], [0, 0, 1, 1], [], []>} : vector<8x128xbf16>, vector<128x128xbf16>, vector<8x128xf32> -> vector<8x128xf32>
    %c0_9 = arith.constant 0 : index
    %c0_10 = arith.constant 0 : index
    %20 = vector.load %arg12[%c0_9, %c0_10] : memref<8x128xf32, #tpu.memory_space<vmem>>, vector<8x128xf32>
    %c0_11 = arith.constant 0 : index
    %c0_12 = arith.constant 0 : index
    %21 = vector.load %arg13[%c0_11, %c0_12] : memref<8x128xf32, #tpu.memory_space<vmem>>, vector<8x128xf32>
    %c0_13 = arith.constant 0 : index
    %c0_14 = arith.constant 0 : index
    %22 = vector.load %arg4[%c0_13, %c0_14] : memref<128x512xbf16, #tpu.memory_space<vmem>>, vector<128x512xbf16>
    %c0_15 = arith.constant 0 : index
    %c0_16 = arith.constant 0 : index
    %23 = vector.load %arg5[%c0_15, %c0_16] : memref<128x512xbf16, #tpu.memory_space<vmem>>, vector<128x512xbf16>
    %c0_17 = arith.constant 0 : index
    %c0_18 = arith.constant 0 : index
    %24 = vector.load %arg6[%c0_17, %c0_18] : memref<1x512xf32, #tpu.memory_space<vmem>>, vector<1x512xf32>
    %25 = arith.truncf %19 : vector<8x128xf32> to vector<8x128xbf16>
    %cst_19 = arith.constant dense<0.000000e+00> : vector<8x512xf32>
    %26 = tpu.matmul %25, %22, %cst_19 {dimension_numbers = #tpu.dot_dimension_numbers<[1], [0], [0], [1], [0, 0, 1, 1], [], []>} : vector<8x128xbf16>, vector<128x512xbf16>, vector<8x512xf32> -> vector<8x512xf32>
    %27 = arith.truncf %20 : vector<8x128xf32> to vector<8x128xbf16>
    %cst_20 = arith.constant dense<0.000000e+00> : vector<8x512xf32>
    %28 = tpu.matmul %27, %23, %cst_20 {dimension_numbers = #tpu.dot_dimension_numbers<[1], [0], [0], [1], [0, 0, 1, 1], [], []>} : vector<8x128xbf16>, vector<128x512xbf16>, vector<8x512xf32> -> vector<8x512xf32>
    %29 = arith.addf %26, %28 : vector<8x512xf32>
    %30 = vector.broadcast %24 : vector<1x512xf32> to vector<8x512xf32>
    %31 = arith.addf %29, %30 : vector<8x512xf32>
    %32 = vector.extract_strided_slice %31 {offsets = [0, 0], sizes = [8, 128], strides = [1, 1]} : vector<8x512xf32> to vector<8x128xf32>
    %33 = arith.negf %32 : vector<8x128xf32>
    %34 = math.exp %33 : vector<8x128xf32>
    %cst_21 = arith.constant 1.000000e+00 : f32
    %35 = vector.broadcast %cst_21 : f32 to vector<8x128xf32>
    %36 = arith.addf %35, %34 : vector<8x128xf32>
    %37 = arith.divf %35, %36 : vector<8x128xf32>
    %38 = vector.extract_strided_slice %31 {offsets = [0, 128], sizes = [8, 128], strides = [1, 1]} : vector<8x512xf32> to vector<8x128xf32>
    %39 = arith.negf %38 : vector<8x128xf32>
    %40 = math.exp %39 : vector<8x128xf32>
    %cst_22 = arith.constant 1.000000e+00 : f32
    %41 = vector.broadcast %cst_22 : f32 to vector<8x128xf32>
    %42 = arith.addf %41, %40 : vector<8x128xf32>
    %43 = arith.divf %41, %42 : vector<8x128xf32>
    %44 = vector.extract_strided_slice %31 {offsets = [0, 256], sizes = [8, 128], strides = [1, 1]} : vector<8x512xf32> to vector<8x128xf32>
    %45 = math.tanh %44 : vector<8x128xf32>
    %46 = vector.extract_strided_slice %31 {offsets = [0, 384], sizes = [8, 128], strides = [1, 1]} : vector<8x512xf32> to vector<8x128xf32>
    %47 = arith.negf %46 : vector<8x128xf32>
    %48 = math.exp %47 : vector<8x128xf32>
    %cst_23 = arith.constant 1.000000e+00 : f32
    %49 = vector.broadcast %cst_23 : f32 to vector<8x128xf32>
    %50 = arith.addf %49, %48 : vector<8x128xf32>
    %51 = arith.divf %49, %50 : vector<8x128xf32>
    %52 = arith.mulf %43, %21 : vector<8x128xf32>
    %53 = arith.mulf %37, %45 : vector<8x128xf32>
    %54 = arith.addf %52, %53 : vector<8x128xf32>
    %55 = math.tanh %54 : vector<8x128xf32>
    %56 = arith.mulf %51, %55 : vector<8x128xf32>
    %c0_24 = arith.constant 0 : index
    %c0_25 = arith.constant 0 : index
    %57 = vector.load %arg12[%c0_24, %c0_25] : memref<8x128xf32, #tpu.memory_space<vmem>>, vector<8x128xf32>
    tpu.vector_store %arg12[%c0_24, %c0_25], %56 {strides = array<i32>} : memref<8x128xf32, #tpu.memory_space<vmem>>, vector<8x128xf32>,
    %c0_26 = arith.constant 0 : index
    %c0_27 = arith.constant 0 : index
    %58 = vector.load %arg13[%c0_26, %c0_27] : memref<8x128xf32, #tpu.memory_space<vmem>>, vector<8x128xf32>
    tpu.vector_store %arg13[%c0_26, %c0_27], %54 {strides = array<i32>} : memref<8x128xf32, #tpu.memory_space<vmem>>, vector<8x128xf32>,
    %59 = arith.truncf %56 : vector<8x128xf32> to vector<8x128xbf16>
    %c0_28 = arith.constant 0 : index
    %c0_29 = arith.constant 0 : index
    %60 = vector.load %arg7[%c0_28, %c0_29] : memref<128x128xbf16, #tpu.memory_space<vmem>>, vector<128x128xbf16>
    %cst_30 = arith.constant dense<0.000000e+00> : vector<8x128xf32>
    %61 = tpu.matmul %59, %60, %cst_30 {dimension_numbers = #tpu.dot_dimension_numbers<[1], [0], [0], [1], [0, 0, 1, 1], [], []>} : vector<8x128xbf16>, vector<128x128xbf16>, vector<8x128xf32> -> vector<8x128xf32>
    %c0_31 = arith.constant 0 : index
    %c0_32 = arith.constant 0 : index
    %62 = vector.load %arg8[%c0_31, %c0_32] : memref<1x128xf32, #tpu.memory_space<vmem>>, vector<1x128xf32>
    %63 = vector.broadcast %62 : vector<1x128xf32> to vector<8x128xf32>
    %64 = arith.addf %61, %63 : vector<8x128xf32>
    %c0_33 = arith.constant 0 : index
    %c0_34 = arith.constant 0 : index
    %c0_35 = arith.constant 0 : index
    %65 = vector.load %arg11[%c0_33, %c0_34, %c0_35] : memref<1x8x128xf32, #tpu.memory_space<vmem>>, vector<1x8x128xf32>
    %66 = vector.shape_cast %65 : vector<1x8x128xf32> to vector<8x128xf32>
    %67 = vector.shape_cast %64 : vector<8x128xf32> to vector<1x8x128xf32>
    tpu.vector_store %arg11[%c0_33, %c0_34, %c0_35], %67 {strides = array<i32>} : memref<1x8x128xf32, #tpu.memory_space<vmem>>, vector<1x8x128xf32>,
    %68 = tpu.iota {dimensions = array<i32: 1>} : vector<8x128xi32>
    %69 = arith.sitofp %68 : vector<8x128xi32> to vector<8x128xf32>
    %cst_36 = arith.constant dense<0xFF800000> : vector<8xf32>
    %70 = vector.multi_reduction <maximumf>, %64, %cst_36 [1] : vector<8x128xf32> to vector<8xf32>
    %71 = vector.shape_cast %70 : vector<8xf32> to vector<8x1xf32>
    %72 = vector.broadcast %71 : vector<8x1xf32> to vector<8x128xf32>
    %73 = arith.cmpf oeq, %64, %72 : vector<8x128xf32>
    %cst_37 = arith.constant 1.280000e+02 : f32
    %74 = vector.broadcast %cst_37 : f32 to vector<8x128xf32>
    %75 = arith.select %73, %69, %74 : vector<8x128xi1>, vector<8x128xf32>
    %cst_38 = arith.constant dense<0x7F800000> : vector<8xf32>
    %76 = vector.multi_reduction <minimumf>, %75, %cst_38 [1] : vector<8x128xf32> to vector<8xf32>
    %77 = vector.shape_cast %76 : vector<8xf32> to vector<8x1xf32>
    %78 = vector.broadcast %77 : vector<8x1xf32> to vector<8x128xf32>
    %79 = arith.cmpf oeq, %69, %78 : vector<8x128xf32>
    %80 = arith.extui %79 : vector<8x128xi1> to vector<8x128xi32>
    %81 = arith.sitofp %80 : vector<8x128xi32> to vector<8x128xf32>
    %c0_39 = arith.constant 0 : index
    %c0_40 = arith.constant 0 : index
    %82 = vector.load %arg14[%c0_39, %c0_40] : memref<8x128xf32, #tpu.memory_space<vmem>>, vector<8x128xf32>
    tpu.vector_store %arg14[%c0_39, %c0_40], %81 {strides = array<i32>} : memref<8x128xf32, #tpu.memory_space<vmem>>, vector<8x128xf32>,
    return
  }
  func.func @transform_0(%arg0: i32, %arg1: memref<7xi32, #tpu.memory_space<smem>>) -> (i32, i32, i32) {
    %c0_i32 = arith.constant 0 : i32
    %c0_i32_0 = arith.constant 0 : i32
    %c0_i32_1 = arith.constant 0 : i32
    return %arg0, %c0_i32, %c0_i32_0 : i32, i32, i32
  }
  func.func @transform_1(%arg0: i32, %arg1: memref<7xi32, #tpu.memory_space<smem>>) -> (i32, i32) {
    %c0_i32 = arith.constant 0 : i32
    %c0_i32_0 = arith.constant 0 : i32
    %c0_i32_1 = arith.constant 0 : i32
    return %c0_i32, %c0_i32_0 : i32, i32
  }
  func.func @transform_2(%arg0: i32, %arg1: memref<7xi32, #tpu.memory_space<smem>>) -> (i32, i32) {
    %c0_i32 = arith.constant 0 : i32
    %c0_i32_0 = arith.constant 0 : i32
    %c0_i32_1 = arith.constant 0 : i32
    return %c0_i32, %c0_i32_0 : i32, i32
  }
  func.func @transform_3(%arg0: i32, %arg1: memref<7xi32, #tpu.memory_space<smem>>) -> (i32, i32) {
    %c0_i32 = arith.constant 0 : i32
    %c0_i32_0 = arith.constant 0 : i32
    %c0_i32_1 = arith.constant 0 : i32
    return %c0_i32, %c0_i32_0 : i32, i32
  }
  func.func @transform_4(%arg0: i32, %arg1: memref<7xi32, #tpu.memory_space<smem>>) -> (i32, i32) {
    %c0_i32 = arith.constant 0 : i32
    %c0_i32_0 = arith.constant 0 : i32
    %c0_i32_1 = arith.constant 0 : i32
    return %c0_i32, %c0_i32_0 : i32, i32
  }
  func.func @transform_5(%arg0: i32, %arg1: memref<7xi32, #tpu.memory_space<smem>>) -> (i32, i32) {
    %c0_i32 = arith.constant 0 : i32
    %c0_i32_0 = arith.constant 0 : i32
    %c0_i32_1 = arith.constant 0 : i32
    return %c0_i32, %c0_i32_0 : i32, i32
  }
  func.func @transform_6(%arg0: i32, %arg1: memref<7xi32, #tpu.memory_space<smem>>) -> (i32, i32) {
    %c0_i32 = arith.constant 0 : i32
    %c0_i32_0 = arith.constant 0 : i32
    %c0_i32_1 = arith.constant 0 : i32
    return %c0_i32, %c0_i32_0 : i32, i32
  }
  func.func @transform_7(%arg0: i32, %arg1: memref<7xi32, #tpu.memory_space<smem>>) -> (i32, i32) {
    %c0_i32 = arith.constant 0 : i32
    %c0_i32_0 = arith.constant 0 : i32
    %c0_i32_1 = arith.constant 0 : i32
    return %c0_i32, %c0_i32_0 : i32, i32
  }
  func.func @transform_8(%arg0: i32, %arg1: memref<7xi32, #tpu.memory_space<smem>>) -> (i32, i32) {
    %c0_i32 = arith.constant 0 : i32
    %c0_i32_0 = arith.constant 0 : i32
    %c0_i32_1 = arith.constant 0 : i32
    return %c0_i32, %c0_i32_0 : i32, i32
  }
  func.func @transform_9(%arg0: i32, %arg1: memref<7xi32, #tpu.memory_space<smem>>) -> (i32, i32, i32) {
    %c0_i32 = arith.constant 0 : i32
    %c0_i32_0 = arith.constant 0 : i32
    %c0_i32_1 = arith.constant 0 : i32
    return %arg0, %c0_i32, %c0_i32_0 : i32, i32, i32
  }
}

</mosaic_0001>

<bundles_post_ra>
// kernel: seq2seq_forward.3
= control target key start
LH: loop header
LB: loop body
LE: loop exit
PB: predicated region body
PF: predicated region fallthrough
CT: control target
= control target key end

     0   :  { %s1926_s0 = inlined_call_operand.vmem [shape: s32[7], index: 0, kind: input, shape index: {}]   ;;  %s1927_s1 = inlined_call_operand.vmem [shape: f32[7,8,128], index: 1, kind: input, shape index: {}]   ;;  %s1928_s2 = inlined_call_operand.vmem [shape: bf16[128,128], index: 2, kind: input, shape index: {}]   ;;  %s1929_s3 = inlined_call_operand.vmem [shape: bf16[128,512], index: 3, kind: input, shape index: {}]   ;;  %s1930_s4 = inlined_call_operand.vmem [shape: bf16[128,512], index: 4, kind: input, shape index: {}]   ;;  %s1931_s5 = inlined_call_operand.vmem [shape: f32[1,512], index: 5, kind: input, shape index: {}]   ;;  %s1932_s6 = inlined_call_operand.vmem [shape: bf16[128,128], index: 6, kind: input, shape index: {}]   ;;  %s1933_s7 = inlined_call_operand.vmem [shape: f32[1,128], index: 7, kind: input, shape index: {}]   ;;  %s1934_s8 = inlined_call_operand.vmem [shape: f32[8,128], index: 8, kind: input, shape index: {}]   ;;  %s1935_s9 = inlined_call_operand.vmem [shape: f32[8,128], index: 9, kind: input, shape index: {}]   ;;  %s1936_s10 = inlined_call_operand.vmem [shape: f32[7,8,128], index: 10, kind: output, shape index: {}]  }
   0x1   :  { %s15_s15 = sshll.u32 %s1926_s0, 4  ;;  %s16_s15 = int_to_ptr.vmem [resolvable:$true] %s15_s15 }
   0x2   :  { %s1539_s16 = scalar_lea.vmem %s16_s15, 16  ;;  %p1544_p1 = scmp.lt.s32.totalorder %s16_s15, %s16_s15 }
   0x3   :  { %p1540_p0 = scmp.ne.s32.totalorder %s16_s15, %s1539_s16  ;;  %p1545_p2 = scmp.lt.s32.totalorder %s1539_s16, %s1539_s16 }
   0x5   :  { %p1546_p3 = por %p1545_p2, %p1544_p1 }
   0x7   :  { %p1547_p4 = pnand %p1546_p3, %p1540_p0 }
   0x9   :  { %1550 = shalt.err (!%p1547_p4)  }
   0xa   :  { %s1561_s17 = smov [#allocation6]  }
   0xb   :  { %18 = dma.vmem_to_smem %s16_s15, 16, %s1561_s17, [#allocation5] }
   0xc   :  { %1555 = dma.done.wait [#allocation5], 16 }
   0xd   :  { %1556 = vsyncadd [#allocation5], 4294967280 }
   0xe   :  { %20 = sfence }
   0xf   :  { %s1624_s18 = smov 0  }
  0x10 LB: > { %s1245_s0 = sadd.s32 4294967295, %s1559_s18   ;;  %p1249_p5 = scmp.ge.s32.totalorder %s1559_s18, 1  ;;  %s1559_s18 = sphi %s1624_s18, %s26_s18  }
  0x11   : > { %p293_p6 = scmp.lt.s32.totalorder %s1559_s18, 8 }
  0x13   : > { %p294_p7 = pnand %p1249_p5, %p293_p6 }
  0x14   : > { %p327_p8 = scmp.lt.s32.totalorder (!%p294_p7), %s1245_s0, 6  ;;  %p1252_p9 = scmp.ne.s32.totalorder (!%p294_p7), %s1245_s0, 0 }
  0x15   : > { %297 = sbr.rel (%p294_p7) target bundleno = 992 (0x3e0), region = 56 }
  0x1a   : > { %s328_s19 = scalar_select %p327_p8, %s1245_s0, 6 }
  0x1b   : > { %339 = sbr.rel (%p1252_p9) target bundleno = 35 (0x23), region = 60 }
  0x1c   : > { %s1250_s20 = sshll.u32 %s328_s19, 3 }
  0x1d   : > { %s1635_s23 = scalar_lea.vmem %s1927_s1, %s1250_s20  ;;  %s1640_s26 = scalar_lea.vmem %s1936_s10, %s1250_s20 }
  0x20   : > { %v340_v0 = vld [vmem:[%s1934_s8] sm:$0xff]  ;;  %v1562_v2 = vmov 0.0  }
  0x21   : > { %v342_v1 = vld [vmem:[%s1935_s9] sm:$0xff]  ;;  %341 = vst [vmem:[#allocation2] sm:$0xff] %v340_v0  ;;  %344 = vst [vmem:[#allocation4] sm:$0xff] %v1562_v2 }
  0x22   : > { %343 = vst [vmem:[#allocation3] sm:$0xff] %v342_v1 }
  0x23 PF: > { %v1411_v3 = vld [vmem:[%s1928_s2 + $0x38] sm:$0xff]   ;;  %v1563_v4 = vmov 0.0   ;;  %v1412_v5 = vld [vmem:[%s1928_s2 + $0x30] sm:$0xff]   ;;  %vm1564_vm0 = vmmov 0   ;;  %s345_s15 = sld [smem:[#allocation6 + %s1245_s0]]  ;;  %v1565_v6 = vmov 0  }
  0x24   : > { %1358 = vmatprep.subr.bf16.mxu0 %v1563_v4  ;;  %1374 = vmatprep.mubr.msk.bf16.mxu0 %vm1564_vm0, %v1563_v4  ;;  %v1413_v7 = vld [vmem:[%s1928_s2 + $0x28] sm:$0xff]   ;;  %v1414_v8 = vld [vmem:[%s1928_s2 + $0x20] sm:$0xff]   ;;  %v1415_v14 = vld [vmem:[%s1928_s2 + $0x18] sm:$0xff]  }
  0x25   : > { %1359 = vmatpush3.bf16.msra.mxu0 %v1411_v3  ;;  %723 = vmatprep.mubr.bf16.mxu1 %v1565_v6  ;;  %v1419_v9 = vld [vmem:[%s1930_s4 + $0xe4] ss:$16 sps:$4 sm:$0xff]   ;;  %v1421_v10 = vld [vmem:[%s1930_s4 + $0xe0] ss:$16 sps:$4 sm:$0xff]   ;;  %v1417_v26 = vld [vmem:[%s1928_s2 + $0x8] sm:$0xff]  }
  0x26   : > { %1360 = vmatprep.subr.bf16.mxu0 %v1563_v4  ;;  %v1422_v11 = vld [vmem:[%s1930_s4 + $0xc4] ss:$16 sps:$4 sm:$0xff]   ;;  %691 = vmatprep.subr.bf16.mxu1 %v1419_v9  ;;  %v1424_v12 = vld [vmem:[%s1930_s4 + $0xc0] ss:$16 sps:$4 sm:$0xff]   ;;  %v1427_v31 = vld [vmem:[%s1930_s4 + $0xec] ss:$16 sps:$4 sm:$0xff]  }
  0x27   : > { %692 = vmatpush1.bf16.msra.mxu1 %v1421_v10  ;;  %v1428_v13 = vld [vmem:[%s1930_s4 + $0xa4] ss:$16 sps:$4 sm:$0xff]   ;;  %v1430_v16 = vld [vmem:[%s1930_s4 + $0xa0] ss:$16 sps:$4 sm:$0xff]   ;;  %v1425_v35 = vld [vmem:[%s1930_s4 + $0xe8] ss:$16 sps:$4 sm:$0xff]  }
  0x28   : > { %693 = vmatprep.subr.bf16.mxu1 %v1422_v11  ;;  %v1416_v15 = vld [vmem:[%s1928_s2 + $0x10] sm:$0xff]   ;;  %v349_v17 = vld [vmem:[%s1635_s23] sm:$0xff]  ;;  %v1433_v36 = vld [vmem:[%s1930_s4 + $0xcc] ss:$16 sps:$4 sm:$0xff]  }
  0x29   : > { %1361 = vmatpush3.bf16.msra.mxu0 %v1412_v5  ;;  %p346_p10 = scmp.ne.s32.totalorder %s345_s15, 0  ;;  %v1434_v18 = vld [vmem:[%s1930_s4 + $0x84] ss:$16 sps:$4 sm:$0xff]   ;;  %v1436_v22 = vld [vmem:[%s1930_s4 + $0x80] ss:$16 sps:$4 sm:$0xff]  }
  0x2a   : > { %1362 = vmatprep.subr.bf16.mxu0 %v1563_v4  ;;  %v353_v20 = vld [vmem:[#allocation4] sm:$0xff]  ;;  %v1418_v30 = vld [vmem:[%s1928_s2] sm:$0xff]   ;;  %v1431_v39 = vld [vmem:[%s1930_s4 + $0xc8] ss:$16 sps:$4 sm:$0xff]  }
  0x2b   : > { %s347_s25 = scalar_select %p346_p10, 1, 0  ;;  %694 = vmatpush1.bf16.msra.mxu1 %v1424_v12  ;;  %v1440_v25 = vld [vmem:[%s1930_s4 + $0x64] ss:$16 sps:$4 sm:$0xff]   ;;  %v1442_v27 = vld [vmem:[%s1930_s4 + $0x60] ss:$16 sps:$4 sm:$0xff]  }
  0x2c   : > { %695 = vmatprep.subr.bf16.mxu1 %v1428_v13  ;;  %v1446_v29 = vld [vmem:[%s1930_s4 + $0x44] ss:$16 sps:$4 sm:$0xff]   ;;  %v1448_v32 = vld [vmem:[%s1930_s4 + $0x40] ss:$16 sps:$4 sm:$0xff]   ;;  %v1439_v40 = vld [vmem:[%s1930_s4 + $0xac] ss:$16 sps:$4 sm:$0xff]  }
  0x2d   : > { %1363 = vmatpush3.bf16.msra.mxu0 %v1413_v7  ;;  %s348_s29 = scvt.s32.f32 %s347_s25  ;;  %v1452_v34 = vld [vmem:[%s1930_s4 + $0x24] ss:$16 sps:$4 sm:$0xff]   ;;  %v1454_v37 = vld [vmem:[%s1930_s4 + $0x20] ss:$16 sps:$4 sm:$0xff]   ;;  %v1437_v44 = vld [vmem:[%s1930_s4 + $0xa8] ss:$16 sps:$4 sm:$0xff]  }
  0x2e   : > { %1364 = vmatprep.subr.bf16.mxu0 %v1563_v4  ;;  %v1458_v38 = vld [vmem:[%s1930_s4 + $0x4] ss:$16 sps:$4 sm:$0xff]   ;;  %v1460_v41 = vld [vmem:[%s1930_s4] ss:$16 sps:$4 sm:$0xff]   ;;  %v1445_v45 = vld [vmem:[%s1930_s4 + $0x8c] ss:$16 sps:$4 sm:$0xff]  }
  0x2f   : > { %s352_s16 = ssub.f32 1.0, %s348_s29  ;;  %v350_v19 = vstv %s348_s29  ;;  %696 = vmatpush1.bf16.msra.mxu1 %v1430_v16  ;;  %v462_v42 = vld [vmem:[#allocation2] sm:$0xff]  ;;  %v1443_v49 = vld [vmem:[%s1930_s4 + $0x88] ss:$16 sps:$4 sm:$0xff]   ;;  %v1451_v50 = vld [vmem:[%s1930_s4 + $0x6c] ss:$16 sps:$4 sm:$0xff]  }
  0x30   : > { %v351_v23 = vmul.f32 %v350_v19, %v349_v17  ;;  %697 = vmatprep.subr.bf16.mxu1 %v1434_v18  ;;  %v1469_v43 = vld [vmem:[%s1929_s3 + $0xe4] ss:$16 sps:$4 sm:$0xff]   ;;  %v530_v46 = vpack.c.bf16 %v462_v42, %v462_v42  ;;  %v1467_v47 = vld [vmem:[%s1929_s3 + $0xe0] ss:$16 sps:$4 sm:$0xff]   ;;  %v1449_v53 = vld [vmem:[%s1930_s4 + $0x68] ss:$16 sps:$4 sm:$0xff]  }
  0x31   : > { %1365 = vmatpush3.bf16.msra.mxu0 %v1414_v8  ;;  %v354_v21 = vstv %s352_s16  ;;  %v1475_v48 = vld [vmem:[%s1929_s3 + $0xc4] ss:$16 sps:$4 sm:$0xff]   ;;  %v1473_v51 = vld [vmem:[%s1929_s3 + $0xc0] ss:$16 sps:$4 sm:$0xff]   ;;  %v1457_v54 = vld [vmem:[%s1930_s4 + $0x4c] ss:$16 sps:$4 sm:$0xff]  }
  0x32   : > { %1366 = vmatprep.subr.bf16.mxu0 %v1563_v4  ;;  %v355_v24 = vmul.f32 %v354_v21, %v353_v20  ;;  %v1481_v52 = vld [vmem:[%s1929_s3 + $0xa4] ss:$16 sps:$4 sm:$0xff]   ;;  %v1455_v55 = vld [vmem:[%s1930_s4 + $0x48] ss:$16 sps:$4 sm:$0xff]   ;;  %v1479_v56 = vld [vmem:[%s1929_s3 + $0xa0] ss:$16 sps:$4 sm:$0xff]  }
  0x33   : > { %698 = vmatpush1.bf16.msra.mxu1 %v1436_v22  ;;  %v1487_v57 = vld [vmem:[%s1929_s3 + $0x84] ss:$16 sps:$4 sm:$0xff]   ;;  %v1463_v58 = vld [vmem:[%s1930_s4 + $0x2c] ss:$16 sps:$4 sm:$0xff]   ;;  %v1485_v59 = vld [vmem:[%s1929_s3 + $0x80] ss:$16 sps:$4 sm:$0xff]  }
  0x34   : > { %v356_v28 = vadd.f32 %v355_v24, %v351_v23  ;;  %699 = vmatprep.subr.bf16.mxu1 %v1440_v25  ;;  %v1493_v60 = vld [vmem:[%s1929_s3 + $0x64] ss:$16 sps:$4 sm:$0xff]   ;;  %v1461_v61 = vld [vmem:[%s1930_s4 + $0x28] ss:$16 sps:$4 sm:$0xff]   ;;  %v1466_v62 = vld [vmem:[%s1930_s4 + $0xc] ss:$16 sps:$4 sm:$0xff]  }
  0x35   : > { %1367 = vmatpush3.bf16.msra.mxu0 %v1415_v14  ;;  %v1491_v63 = vld [vmem:[%s1929_s3 + $0x60] ss:$16 sps:$4 sm:$0xff]   ;;  %v1499_v0 = vld [vmem:[%s1929_s3 + $0x44] ss:$16 sps:$4 sm:$0xff]   ;;  %v1464_v1 = vld [vmem:[%s1930_s4 + $0x8] ss:$16 sps:$4 sm:$0xff]  }
  0x36   : > { %1368 = vmatprep.subr.bf16.mxu0 %v1563_v4  ;;  %v357_v33 = vpack.c.bf16 %v356_v28, %v356_v28  ;;  %v1472_v2 = vld [vmem:[%s1929_s3 + $0xec] ss:$16 sps:$4 sm:$0xff]   ;;  %v1497_v3 = vld [vmem:[%s1929_s3 + $0x40] ss:$16 sps:$4 sm:$0xff]   ;;  %v1505_v5 = vld [vmem:[%s1929_s3 + $0x24] ss:$16 sps:$4 sm:$0xff]  }
  0x37   : > { %700 = vmatpush1.bf16.msra.mxu1 %v1442_v27  ;;  %v1470_v7 = vld [vmem:[%s1929_s3 + $0xe8] ss:$16 sps:$4 sm:$0xff]   ;;  %v1478_v8 = vld [vmem:[%s1929_s3 + $0xcc] ss:$16 sps:$4 sm:$0xff]   ;;  %v1503_v9 = vld [vmem:[%s1929_s3 + $0x20] ss:$16 sps:$4 sm:$0xff]  }
  0x38   : > { %701 = vmatprep.subr.bf16.mxu1 %v1446_v29  ;;  %v1511_v10 = vld [vmem:[%s1929_s3 + $0x4] ss:$16 sps:$4 sm:$0xff]   ;;  %v1476_v11 = vld [vmem:[%s1929_s3 + $0xc8] ss:$16 sps:$4 sm:$0xff]   ;;  %v1484_v12 = vld [vmem:[%s1929_s3 + $0xac] ss:$16 sps:$4 sm:$0xff]  }
  0x39   : > { %1369 = vmatpush3.bf16.msra.mxu0 %v1416_v15  ;;  %v1509_v13 = vld [vmem:[%s1929_s3] ss:$16 sps:$4 sm:$0xff]   ;;  %v1482_v14 = vld [vmem:[%s1929_s3 + $0xa8] ss:$16 sps:$4 sm:$0xff]   ;;  %v1496_v16 = vld [vmem:[%s1929_s3 + $0x6c] ss:$16 sps:$4 sm:$0xff]  }
  0x3a   : > { %1370 = vmatprep.subr.bf16.mxu0 %v1563_v4  ;;  %v1488_v15 = vld [vmem:[%s1929_s3 + $0x88] ss:$16 sps:$4 sm:$0xff]   ;;  %v1502_v18 = vld [vmem:[%s1929_s3 + $0x4c] ss:$16 sps:$4 sm:$0xff]   ;;  %v1520_v42 = vld [vmem:[%s1932_s6 + $0x10] sm:$0xff]  }
  0x3b   : > { %702 = vmatpush1.bf16.msra.mxu1 %v1448_v32  ;;  %v1494_v17 = vld [vmem:[%s1929_s3 + $0x68] ss:$16 sps:$4 sm:$0xff]   ;;  %v1508_v20 = vld [vmem:[%s1929_s3 + $0x2c] ss:$16 sps:$4 sm:$0xff]  }
  0x3c   : > { %703 = vmatprep.subr.bf16.mxu1 %v1452_v34  ;;  %v1500_v19 = vld [vmem:[%s1929_s3 + $0x48] ss:$16 sps:$4 sm:$0xff]   ;;  %v1514_v22 = vld [vmem:[%s1929_s3 + $0xc] ss:$16 sps:$4 sm:$0xff]  }
  0x3d   : > { %1371 = vmatpush3.bf16.msra.mxu0 %v1417_v26  ;;  %v1506_v21 = vld [vmem:[%s1929_s3 + $0x28] ss:$16 sps:$4 sm:$0xff]  }
  0x3e   : > { %1372 = vmatprep.subr.bf16.mxu0 %v1563_v4  ;;  %v1512_v23 = vld [vmem:[%s1929_s3 + $0x8] ss:$16 sps:$4 sm:$0xff]  }
  0x3f   : > { %704 = vmatpush1.bf16.msra.mxu1 %v1454_v37  ;;  %v1515_v37 = vld [vmem:[%s1932_s6 + $0x38] sm:$0xff]  }
  0x40   : > { %705 = vmatprep.subr.bf16.mxu1 %v1458_v38  ;;  %v1516_v38 = vld [vmem:[%s1932_s6 + $0x30] sm:$0xff]  }
  0x41   : > { %1373 = vmatpush3.bf16.msra.mxu0 %v1418_v30 }
  0x42   : > { %732 = vmatprep.subr.bf16.mxu0 %v1427_v31 }
  0x43   : > { %706 = vmatpush1.bf16.msra.mxu1 %v1460_v41  ;;  %v1519_v41 = vld [vmem:[%s1932_s6 + $0x18] sm:$0xff]  }
  0x44   : > { %1375 = vmatmul.mubr.bf16.vlgmr.msra.gmra.mxu0 %v357_v33  ;;  %933 = vmatprep.subr.bf16.mxu1 %v1469_v43  ;;  %v1521_v43 = vld [vmem:[%s1932_s6 + $0x8] sm:$0xff]  }
  0x45   : > { %733 = vmatpush1.bf16.msra.mxu0 %v1425_v35  ;;  %764 = vmatprep.mubr.bf16.mxu0 %v1565_v6 }
  0x46   : > { %734 = vmatprep.subr.bf16.mxu0 %v1433_v36  ;;  %724 = vmatmul.mubr.bf16.vlgmr.msra.gmra.mxu1 %v530_v46 }
  0x47   : > { %934 = vmatpush1.bf16.msra.mxu1 %v1467_v47  ;;  %965 = vmatprep.mubr.bf16.mxu1 %v1565_v6 }
  0x48   : > { %935 = vmatprep.subr.bf16.mxu1 %v1475_v48  ;;  %v528_v48 = vld [vmem:[%s1931_s5] sm:$0xf] }
  0x49   : > { %735 = vmatpush1.bf16.msra.mxu0 %v1431_v39  ;;  %v1517_v39 = vld [vmem:[%s1932_s6 + $0x28] sm:$0xff]  }
  0x4a   : > { %736 = vmatprep.subr.bf16.mxu0 %v1439_v40  ;;  %v1518_v40 = vld [vmem:[%s1932_s6 + $0x20] sm:$0xff]  }
  0x4b   : > { %936 = vmatpush1.bf16.msra.mxu1 %v1473_v51 }
  0x4c   : > { %937 = vmatprep.subr.bf16.mxu1 %v1481_v52 }
  0x4d   : > { %737 = vmatpush1.bf16.msra.mxu0 %v1437_v44  ;;  %v1522_v44 = vld [vmem:[%s1932_s6] sm:$0xff]  }
  0x4e   : > { %738 = vmatprep.subr.bf16.mxu0 %v1445_v45  ;;  %v1016_v45 = vlaneseq }
  0x4f   : > { %938 = vmatpush1.bf16.msra.mxu1 %v1479_v56 }
  0x50   : > { %939 = vmatprep.subr.bf16.mxu1 %v1487_v57 }
  0x51   : > { %739 = vmatpush1.bf16.msra.mxu0 %v1443_v49 }
  0x52   : > { %740 = vmatprep.subr.bf16.mxu0 %v1451_v50 }
  0x53   : > { %940 = vmatpush1.bf16.msra.mxu1 %v1485_v59 }
  0x54   : > { %941 = vmatprep.subr.bf16.mxu1 %v1493_v60 }
  0x55   : > { %741 = vmatpush1.bf16.msra.mxu0 %v1449_v53 }
  0x56   : > { %742 = vmatprep.subr.bf16.mxu0 %v1457_v54 }
  0x57   : > { %942 = vmatpush1.bf16.msra.mxu1 %v1491_v63 }
  0x58   : > { %943 = vmatprep.subr.bf16.mxu1 %v1499_v0 }
  0x59   : > { %743 = vmatpush1.bf16.msra.mxu0 %v1455_v55 }
  0x5a   : > { %744 = vmatprep.subr.bf16.mxu0 %v1463_v58 }
  0x5b   : > { %944 = vmatpush1.bf16.msra.mxu1 %v1497_v3 }
  0x5c   : > { %945 = vmatprep.subr.bf16.mxu1 %v1505_v5 }
  0x5d   : > { %745 = vmatpush1.bf16.msra.mxu0 %v1461_v61 }
  0x5e   : > { %746 = vmatprep.subr.bf16.mxu0 %v1466_v62 }
  0x5f   : > { %946 = vmatpush1.bf16.msra.mxu1 %v1503_v9 }
  0x60   : > { %947 = vmatprep.subr.bf16.mxu1 %v1511_v10 }
  0x61   : > { %747 = vmatpush1.bf16.msra.mxu0 %v1464_v1 }
  0x62   : > { %974 = vmatprep.subr.bf16.mxu0 %v1472_v2 }
  0x63   : > { %948 = vmatpush1.bf16.msra.mxu1 %v1509_v13 }
  0x64   : > { %765 = vmatmul.mubr.bf16.vlgmr.msra.gmra.mxu0 %v530_v46  ;;  %1378 = vmatprep.subr.bf16.mxu1 %v1563_v4  ;;  %v1017_v46 = vshrl.u32 %v1016_v45, 7 }
  0x65   : > { %975 = vmatpush1.bf16.msra.mxu0 %v1470_v7  ;;  %1006 = vmatprep.mubr.bf16.mxu0 %v1565_v6  ;;  %v1490_v6 = vld [vmem:[%s1929_s3 + $0x8c] ss:$16 sps:$4 sm:$0xff]  }
  0x66   : > { %976 = vmatprep.subr.bf16.mxu0 %v1478_v8  ;;  %v1018_v47 = vsub.s32 0, %v1017_v46  ;;  %v1022_v49 = vsub.s32 1, %v1017_v46  ;;  %v1030_v63 = vsub.s32 3, %v1017_v46  ;;  %v1026_v7 = vsub.s32 2, %v1017_v46 }
  0x68   : > { %v1019_v50 = vrot.slane %v528_v48, %v1018_v47  ;;  %v1023_v54 = vrot.slane %v528_v48, %v1022_v49  ;;  %v1031_v5 = vrot.slane %v528_v48, %v1030_v63  ;;  %v1027_v10 = vrot.slane %v528_v48, %v1026_v7 }
  0x69   : > { %977 = vmatpush1.bf16.msra.mxu0 %v1476_v11 }
  0x6a   : > { %978 = vmatprep.subr.bf16.mxu0 %v1484_v12 }
  0x6d   : > { %979 = vmatpush1.bf16.msra.mxu0 %v1482_v14 }
  0x6e   : > { %980 = vmatprep.subr.bf16.mxu0 %v1490_v6 }
  0x71   : > { %981 = vmatpush1.bf16.msra.mxu0 %v1488_v15 }
  0x72   : > { %982 = vmatprep.subr.bf16.mxu0 %v1496_v16 }
  0x75   : > { %983 = vmatpush1.bf16.msra.mxu0 %v1494_v17 }
  0x76   : > { %984 = vmatprep.subr.bf16.mxu0 %v1502_v18  ;;  %v463_v18 = vld [vmem:[#allocation3] sm:$0xff] }
  0x79   : > { %985 = vmatpush1.bf16.msra.mxu0 %v1500_v19 }
  0x7a   : > { %986 = vmatprep.subr.bf16.mxu0 %v1508_v20 }
  0x7d   : > { %987 = vmatpush1.bf16.msra.mxu0 %v1506_v21 }
  0x7e   : > { %988 = vmatprep.subr.bf16.mxu0 %v1514_v22 }
  0x81   : > { %989 = vmatpush1.bf16.msra.mxu0 %v1512_v23 }
 0x104   : > { %v456_v24 = vpop.f32.mrf.mxu0 }
 0x105   : > { %v529_v25 = vpack.c.bf16 %v456_v24, %v456_v24 }
 0x106   : > { %v1376_v26 = vpop.f32.mrf.mxu0  ;;  %v725_v29 = vpop.f32.mrf.mxu1 }
 0x107   : > { %966 = vmatmul.mubr.bf16.vlgmr.msra.gmra.mxu1 %v529_v25  ;;  %1007 = vmatmul.mubr.bf16.vlgmr.msra.gmra.mxu0 %v529_v25 }
 0x108   : > { %v459_v27 = vpop.f32.mrf.mxu0  ;;  %1394 = vmatprep.mubr.msk.bf16.mxu1 %vm1564_vm0, %v1563_v4  ;;  %v727_v30 = vpop.f32.mrf.mxu1  ;;  %1379 = vmatpush3.bf16.msra.mxu1 %v1515_v37 }
 0x109   : > { %1380 = vmatprep.subr.bf16.mxu1 %v1563_v4 }
 0x10a   : > { %v1377_v28 = vpop.f32.mrf.mxu0  ;;  %v729_v31 = vpop.f32.mrf.mxu1 }
 0x10c   : > { %v730_v32 = vpop.f32.mrf.mxu1  ;;  %1381 = vmatpush3.bf16.msra.mxu1 %v1516_v38 }
 0x10d   : > { %1382 = vmatprep.subr.bf16.mxu1 %v1563_v4 }
 0x110   : > { %1383 = vmatpush3.bf16.msra.mxu1 %v1517_v39 }
 0x111   : > { %1384 = vmatprep.subr.bf16.mxu1 %v1563_v4 }
 0x114   : > { %1385 = vmatpush3.bf16.msra.mxu1 %v1518_v40 }
 0x115   : > { %1386 = vmatprep.subr.bf16.mxu1 %v1563_v4 }
 0x118   : > { %1387 = vmatpush3.bf16.msra.mxu1 %v1519_v41 }
 0x119   : > { %1388 = vmatprep.subr.bf16.mxu1 %v1563_v4 }
 0x11c   : > { %1389 = vmatpush3.bf16.msra.mxu1 %v1520_v42 }
 0x11d   : > { %1390 = vmatprep.subr.bf16.mxu1 %v1563_v4 }
 0x120   : > { %1391 = vmatpush3.bf16.msra.mxu1 %v1521_v43 }
 0x121   : > { %1392 = vmatprep.subr.bf16.mxu1 %v1563_v4 }
 0x124   : > { %v766_v33 = vpop.f32.mrf.mxu0  ;;  %1393 = vmatpush3.bf16.msra.mxu1 %v1522_v44 }
 0x126   : > { %v768_v34 = vpop.f32.mrf.mxu0 }
 0x128   : > { %v770_v35 = vpop.f32.mrf.mxu0 }
 0x129   : > { %v1180_v35 = vand.u32 127, %v1016_v45 }
 0x12a   : > { %v771_v36 = vpop.f32.mrf.mxu0 }
 0x12b   : > { %v1181_v36 = vcvt.s32.f32 %v1180_v35 }
 0x1c7   : > { %v967_v51 = vpop.f32.mrf.mxu1  ;;  %v1008_v52 = vpop.f32.mrf.mxu0 }
 0x1c8   : > { %v968_v53 = vadd.f32 %v967_v51, %v725_v29  ;;  %v1009_v9 = vadd.f32 %v1008_v52, %v766_v33  ;;  %v1328_v29 = vld [vmem:[%s1933_s7] ss:$0 sm:$0xff] }
 0x1c9   : > { %v969_v55 = vpop.f32.mrf.mxu1  ;;  %v1010_v56 = vpop.f32.mrf.mxu0 }
 0x1ca   : > { %v1036_v57 = vadd.f32 %v1019_v50, %v968_v53  ;;  %v970_v58 = vadd.f32 %v969_v55, %v727_v30  ;;  %v1011_v3 = vadd.f32 %v1010_v56, %v768_v34  ;;  %v1038_v13 = vadd.f32 %v1027_v10, %v1009_v9 }
 0x1cb   : > { %v971_v59 = vpop.f32.mrf.mxu1  ;;  %v1012_v60 = vpop.f32.mrf.mxu0 }
 0x1cc   : > { %v1325_v61 = vmul.f32 -1.442695, %v1036_v57  ;;  %v1037_v62 = vadd.f32 %v1023_v54, %v970_v58  ;;  %v1039_v8 = vadd.f32 %v1031_v5, %v1011_v3 }
 0x1cd   : > { %v972_v0 = vpop.f32.mrf.mxu1  ;;  %v1013_v1 = vpop.f32.mrf.mxu0 }
 0x1ce   : > { %1523 = vpow2.f32 %v1325_v61  ;;  %v1326_v2 = vmul.f32 -1.442695, %v1037_v62  ;;  %v1327_v11 = vmul.f32 -1.442695, %v1039_v8 }
 0x1d0   : > { %1525 = vpow2.f32 %v1326_v2 }
 0x1d1   : > { %1527 = vpow2.f32 %v1327_v11 }
 0x1db   : > { %v1524_v12 = vpop.eup %1523 }
 0x1dc   : > { %v1043_v14 = vadd.f32 1.0, %v1524_v12 }
 0x1dd   : > { %v1526_v6 = vpop.eup %1525 }
 0x1de   : > { %1529 = vrcp.f32 %v1043_v14  ;;  %v1049_v15 = vadd.f32 1.0, %v1526_v6  ;;  %v1528_v16 = vpop.eup %1527 }
 0x1df   : > { %1531 = vtanh.f32 %v1038_v13  ;;  %v1056_v21 = vadd.f32 1.0, %v1528_v16 }
 0x1e0   : > { %1533 = vrcp.f32 %v1049_v15 }
 0x1e1   : > { %1535 = vrcp.f32 %v1056_v21 }
 0x1eb   : > { %v1530_v17 = vpop.eup %1529 }
 0x1ec   : > { %v1532_v19 = vpop.eup %1531 }
 0x1ed   : > { %v1534_v20 = vpop.eup %1533  ;;  %v1060_v22 = vmul.f32 %v1532_v19, %v1530_v17 }
 0x1ee   : > { %v1059_v23 = vmul.f32 %v1534_v20, %v463_v18  ;;  %v1536_v25 = vpop.eup %1535 }
 0x1f0   : > { %v1061_v24 = vadd.f32 %v1060_v22, %v1059_v23 }
 0x1f2   : > { %1065 = vst [vmem:[#allocation3] sm:$0xff] %v1061_v24  ;;  %1537 = vtanh.f32 %v1061_v24 }
 0x1ff   : > { %v1538_v26 = vpop.eup %1537 }
 0x200   : > { %v1063_v27 = vmul.f32 %v1538_v26, %v1536_v25 }
 0x202   : > { %1064 = vst [vmem:[#allocation2] sm:$0xff] %v1063_v27  ;;  %v1066_v28 = vpack.c.bf16 %v1063_v27, %v1063_v27 }
 0x204   : > { %1395 = vmatmul.mubr.bf16.vlgmr.msra.gmra.mxu1 %v1066_v28 }
 0x2c4   : > { %v1172_v30 = vpop.f32.mrf.mxu1 }
 0x2c5   : > { %v1173_v31 = vadd.f32 %v1328_v29, %v1172_v30 }
 0x2c6   : > { %v1396_v32 = vpop.f32.mrf.mxu1 }
 0x2c7   : > { %1178 = vst [vmem:[%s1640_s26] sm:$0xff] %v1173_v31  ;;  %1182 = vmax.xlane.f32.xlu0 %v1173_v31 }
 0x2c8   : > { %v1175_v33 = vpop.f32.mrf.mxu1 }
 0x2ca   : > { %v1397_v34 = vpop.f32.mrf.mxu1 }
 0x350   : > { %v1183_v37 = vpop.xlane.xlu0 %1182 }
 0x351   : > { %vm1184_vm1 = vcmp.eq.f32.partialorder %v1173_v31, %v1183_v37 }
 0x352   : > { %v1185_v38 = vsel %vm1184_vm1, %v1181_v36, 128.0 }
 0x353   : > { %1186 = vmin.xlane.f32.xlu0 %v1185_v38 }
 0x3dc   : > { %v1187_v39 = vpop.xlane.xlu0 %1186 }
 0x3dd   : > { %vm1188_vm2 = vcmp.eq.f32.partialorder %v1181_v36, %v1187_v39 }
 0x3de   : > { %v1337_v40 = vsel %vm1188_vm2, 1.0, %v1563_v4 }
 0x3df   : > { %1191 = vst [vmem:[#allocation4] sm:$0xff] %v1337_v40 }
 0x3e0 PF: > { %s26_s18 = sadd.s32 1, %s1559_s18  }
 0x3e1   : > { %p23_p11 = scmp.ge.s32.totalorder %s26_s18, 9  }
 0x3e3   :  { %25 = sbr.rel (!%p23_p11) target bundleno = 16 (0x10), region = 90 }

// kernel: seq2seq_forward.2
= control target key start
LH: loop header
LB: loop body
LE: loop exit
PB: predicated region body
PF: predicated region fallthrough
CT: control target
= control target key end

     0   :  { %s1273_s21 = smov 0   ;;  %s1531_s0 = inlined_call_operand.vmem [shape: bf16[8,8,128], index: 0, kind: input, shape index: {}]   ;;  %s1532_s1 = inlined_call_operand.vmem [shape: bf16[128,128], index: 1, kind: input, shape index: {}]   ;;  %s1533_s2 = inlined_call_operand.vmem [shape: bf16[128,512], index: 2, kind: input, shape index: {}]   ;;  %s1534_s3 = inlined_call_operand.vmem [shape: bf16[128,512], index: 3, kind: input, shape index: {}]   ;;  %s1535_s4 = inlined_call_operand.vmem [shape: f32[1,512], index: 4, kind: input, shape index: {}]   ;;  %s1536_s5 = inlined_call_operand.vmem [shape: f32[8,128], index: 5, kind: output, shape index: {0}]   ;;  %s1537_s6 = inlined_call_operand.vmem [shape: f32[8,128], index: 6, kind: output, shape index: {1}]  }
   0x1 LB: > { %s982_s22 = sadd.s32 4294967295, %s1232_s21   ;;  %p985_p0 = scmp.ge.s32.totalorder %s1232_s21, 1  ;;  %s1232_s21 = sphi %s1273_s21, %s17_s21  }
   0x2   : > { %p204_p1 = scmp.lt.s32.totalorder %s1232_s21, 9 }
   0x4   : > { %p205_p2 = pnand %p985_p0, %p204_p1 }
   0x5   : > { %p228_p3 = scmp.lt.s32.totalorder (!%p205_p2), %s982_s22, 7  ;;  %p987_p4 = scmp.ne.s32.totalorder (!%p205_p2), %s982_s22, 0 }
   0x6   : > { %208 = sbr.rel (%p205_p2) target bundleno = 499 (0x1f3), region = 40 }
   0xb   : > { %s229_s23 = scalar_select %p228_p3, %s982_s22, 7 }
   0xc   : > { %236 = sbr.rel (%p987_p4) target bundleno = 19 (0x13), region = 44 }
   0xd   : > { %s986_s24 = sshll.u32 %s229_s23, 2 }
   0xe   : > { %s1284_s27 = scalar_lea.vmem %s1531_s0, %s986_s24 }
  0x11   : > { %v1234_v0 = vmov 0.0  }
  0x12   : > { %237 = vst [vmem:[%s1536_s5] sm:$0xff] %v1234_v0  ;;  %238 = vst [vmem:[%s1537_s6] sm:$0xff] %v1234_v0 }
  0x13 PF: > { %v1106_v1 = vld [vmem:[%s1532_s1 + $0x38] sm:$0xff]   ;;  %v1235_v2 = vmov 0.0   ;;  %v1107_v3 = vld [vmem:[%s1532_s1 + $0x30] sm:$0xff]   ;;  %vm1236_vm0 = vmmov 0   ;;  %v1237_v4 = vmov 0   ;;  %v1108_v5 = vld [vmem:[%s1532_s1 + $0x28] sm:$0xff]  }
  0x14   : > { %1074 = vmatprep.subr.bf16.mxu0 %v1235_v2  ;;  %1090 = vmatprep.mubr.msk.bf16.mxu0 %vm1236_vm0, %v1235_v2  ;;  %v1114_v6 = vld [vmem:[%s1534_s3 + $0xe4] ss:$16 sps:$4 sm:$0xff]   ;;  %v1116_v7 = vld [vmem:[%s1534_s3 + $0xe0] ss:$16 sps:$4 sm:$0xff]   ;;  %v1110_v12 = vld [vmem:[%s1532_s1 + $0x18] sm:$0xff]  }
  0x15   : > { %1075 = vmatpush3.bf16.msra.mxu0 %v1106_v1  ;;  %605 = vmatprep.mubr.bf16.mxu1 %v1237_v4  ;;  %v1109_v8 = vld [vmem:[%s1532_s1 + $0x20] sm:$0xff]   ;;  %v1111_v15 = vld [vmem:[%s1532_s1 + $0x10] sm:$0xff]   ;;  %v1112_v18 = vld [vmem:[%s1532_s1 + $0x8] sm:$0xff]  }
  0x16   : > { %1076 = vmatprep.subr.bf16.mxu0 %v1235_v2  ;;  %v1117_v9 = vld [vmem:[%s1534_s3 + $0xc4] ss:$16 sps:$4 sm:$0xff]   ;;  %573 = vmatprep.subr.bf16.mxu1 %v1114_v6  ;;  %v1119_v10 = vld [vmem:[%s1534_s3 + $0xc0] ss:$16 sps:$4 sm:$0xff]   ;;  %v1122_v22 = vld [vmem:[%s1534_s3 + $0xec] ss:$16 sps:$4 sm:$0xff]  }
  0x17   : > { %574 = vmatpush1.bf16.msra.mxu1 %v1116_v7  ;;  %v1123_v11 = vld [vmem:[%s1534_s3 + $0xa4] ss:$16 sps:$4 sm:$0xff]   ;;  %v1125_v13 = vld [vmem:[%s1534_s3 + $0xa0] ss:$16 sps:$4 sm:$0xff]   ;;  %v1120_v26 = vld [vmem:[%s1534_s3 + $0xe8] ss:$16 sps:$4 sm:$0xff]  }
  0x18   : > { %575 = vmatprep.subr.bf16.mxu1 %v1117_v9  ;;  %v1129_v14 = vld [vmem:[%s1534_s3 + $0x84] ss:$16 sps:$4 sm:$0xff]   ;;  %v1131_v16 = vld [vmem:[%s1534_s3 + $0x80] ss:$16 sps:$4 sm:$0xff]   ;;  %v1128_v27 = vld [vmem:[%s1534_s3 + $0xcc] ss:$16 sps:$4 sm:$0xff]  }
  0x19   : > { %1077 = vmatpush3.bf16.msra.mxu0 %v1107_v3  ;;  %v1135_v17 = vld [vmem:[%s1534_s3 + $0x64] ss:$16 sps:$4 sm:$0xff]   ;;  %v1137_v19 = vld [vmem:[%s1534_s3 + $0x60] ss:$16 sps:$4 sm:$0xff]   ;;  %v1126_v30 = vld [vmem:[%s1534_s3 + $0xc8] ss:$16 sps:$4 sm:$0xff]  }
  0x1a   : > { %1078 = vmatprep.subr.bf16.mxu0 %v1235_v2  ;;  %v1141_v20 = vld [vmem:[%s1534_s3 + $0x44] ss:$16 sps:$4 sm:$0xff]   ;;  %v1143_v23 = vld [vmem:[%s1534_s3 + $0x40] ss:$16 sps:$4 sm:$0xff]   ;;  %v1134_v31 = vld [vmem:[%s1534_s3 + $0xac] ss:$16 sps:$4 sm:$0xff]  }
  0x1b   : > { %576 = vmatpush1.bf16.msra.mxu1 %v1119_v10  ;;  %v1113_v21 = vld [vmem:[%s1532_s1] sm:$0xff]   ;;  %v1132_v35 = vld [vmem:[%s1534_s3 + $0xa8] ss:$16 sps:$4 sm:$0xff]   ;;  %v1140_v36 = vld [vmem:[%s1534_s3 + $0x8c] ss:$16 sps:$4 sm:$0xff]  }
  0x1c   : > { %577 = vmatprep.subr.bf16.mxu1 %v1123_v11  ;;  %v239_v24 = vld [vmem:[%s1284_s27] sm:$0xf]  ;;  %v1147_v25 = vld [vmem:[%s1534_s3 + $0x24] ss:$16 sps:$4 sm:$0xff]   ;;  %v1138_v40 = vld [vmem:[%s1534_s3 + $0x88] ss:$16 sps:$4 sm:$0xff]  }
  0x1d   : > { %1079 = vmatpush3.bf16.msra.mxu0 %v1108_v5  ;;  %v1149_v28 = vld [vmem:[%s1534_s3 + $0x20] ss:$16 sps:$4 sm:$0xff]   ;;  %v1153_v29 = vld [vmem:[%s1534_s3 + $0x4] ss:$16 sps:$4 sm:$0xff]   ;;  %v1146_v41 = vld [vmem:[%s1534_s3 + $0x6c] ss:$16 sps:$4 sm:$0xff]  }
  0x1e   : > { %1080 = vmatprep.subr.bf16.mxu0 %v1235_v2  ;;  %v1155_v32 = vld [vmem:[%s1534_s3] ss:$16 sps:$4 sm:$0xff]   ;;  %v1164_v34 = vld [vmem:[%s1533_s2 + $0xe4] ss:$16 sps:$4 sm:$0xff]   ;;  %v1144_v44 = vld [vmem:[%s1534_s3 + $0x68] ss:$16 sps:$4 sm:$0xff]  }
  0x1f   : > { %578 = vmatpush1.bf16.msra.mxu1 %v1125_v13  ;;  %v344_v33 = vld [vmem:[%s1536_s5] sm:$0xff]  ;;  %v1152_v45 = vld [vmem:[%s1534_s3 + $0x4c] ss:$16 sps:$4 sm:$0xff]   ;;  %v1150_v48 = vld [vmem:[%s1534_s3 + $0x48] ss:$16 sps:$4 sm:$0xff]  }
  0x20   : > { %579 = vmatprep.subr.bf16.mxu1 %v1129_v14  ;;  %v412_v37 = vpack.c.bf16 %v344_v33, %v344_v33  ;;  %v1162_v38 = vld [vmem:[%s1533_s2 + $0xe0] ss:$16 sps:$4 sm:$0xff]   ;;  %v1170_v39 = vld [vmem:[%s1533_s2 + $0xc4] ss:$16 sps:$4 sm:$0xff]   ;;  %v1158_v49 = vld [vmem:[%s1534_s3 + $0x2c] ss:$16 sps:$4 sm:$0xff]  }
  0x21   : > { %1081 = vmatpush3.bf16.msra.mxu0 %v1109_v8  ;;  %v1168_v42 = vld [vmem:[%s1533_s2 + $0xc0] ss:$16 sps:$4 sm:$0xff]   ;;  %v1176_v43 = vld [vmem:[%s1533_s2 + $0xa4] ss:$16 sps:$4 sm:$0xff]   ;;  %v1156_v52 = vld [vmem:[%s1534_s3 + $0x28] ss:$16 sps:$4 sm:$0xff]  }
  0x22   : > { %1082 = vmatprep.subr.bf16.mxu0 %v1235_v2  ;;  %v1174_v46 = vld [vmem:[%s1533_s2 + $0xa0] ss:$16 sps:$4 sm:$0xff]   ;;  %v1182_v47 = vld [vmem:[%s1533_s2 + $0x84] ss:$16 sps:$4 sm:$0xff]   ;;  %v1161_v53 = vld [vmem:[%s1534_s3 + $0xc] ss:$16 sps:$4 sm:$0xff]  }
  0x23   : > { %580 = vmatpush1.bf16.msra.mxu1 %v1131_v16  ;;  %v1180_v50 = vld [vmem:[%s1533_s2 + $0x80] ss:$16 sps:$4 sm:$0xff]   ;;  %v1188_v51 = vld [vmem:[%s1533_s2 + $0x64] ss:$16 sps:$4 sm:$0xff]   ;;  %v1159_v56 = vld [vmem:[%s1534_s3 + $0x8] ss:$16 sps:$4 sm:$0xff]  }
  0x24   : > { %581 = vmatprep.subr.bf16.mxu1 %v1135_v17  ;;  %v1186_v54 = vld [vmem:[%s1533_s2 + $0x60] ss:$16 sps:$4 sm:$0xff]   ;;  %v1194_v55 = vld [vmem:[%s1533_s2 + $0x44] ss:$16 sps:$4 sm:$0xff]   ;;  %v1167_v57 = vld [vmem:[%s1533_s2 + $0xec] ss:$16 sps:$4 sm:$0xff]  }
  0x25   : > { %1083 = vmatpush3.bf16.msra.mxu0 %v1110_v12  ;;  %v1192_v58 = vld [vmem:[%s1533_s2 + $0x40] ss:$16 sps:$4 sm:$0xff]   ;;  %v1200_v59 = vld [vmem:[%s1533_s2 + $0x24] ss:$16 sps:$4 sm:$0xff]   ;;  %v1165_v60 = vld [vmem:[%s1533_s2 + $0xe8] ss:$16 sps:$4 sm:$0xff]  }
  0x26   : > { %1084 = vmatprep.subr.bf16.mxu0 %v1235_v2  ;;  %v1173_v61 = vld [vmem:[%s1533_s2 + $0xcc] ss:$16 sps:$4 sm:$0xff]   ;;  %v1198_v62 = vld [vmem:[%s1533_s2 + $0x20] ss:$16 sps:$4 sm:$0xff]   ;;  %v1206_v63 = vld [vmem:[%s1533_s2 + $0x4] ss:$16 sps:$4 sm:$0xff]  }
  0x27   : > { %582 = vmatpush1.bf16.msra.mxu1 %v1137_v19  ;;  %v1171_v0 = vld [vmem:[%s1533_s2 + $0xc8] ss:$16 sps:$4 sm:$0xff]   ;;  %v1179_v1 = vld [vmem:[%s1533_s2 + $0xac] ss:$16 sps:$4 sm:$0xff]  }
  0x28   : > { %583 = vmatprep.subr.bf16.mxu1 %v1141_v20  ;;  %v1177_v3 = vld [vmem:[%s1533_s2 + $0xa8] ss:$16 sps:$4 sm:$0xff]   ;;  %v1191_v6 = vld [vmem:[%s1533_s2 + $0x6c] ss:$16 sps:$4 sm:$0xff]  }
  0x29   : > { %1085 = vmatpush3.bf16.msra.mxu0 %v1111_v15  ;;  %v1183_v5 = vld [vmem:[%s1533_s2 + $0x88] ss:$16 sps:$4 sm:$0xff]   ;;  %v1197_v8 = vld [vmem:[%s1533_s2 + $0x4c] ss:$16 sps:$4 sm:$0xff]  }
  0x2a   : > { %1086 = vmatprep.subr.bf16.mxu0 %v1235_v2  ;;  %v1189_v7 = vld [vmem:[%s1533_s2 + $0x68] ss:$16 sps:$4 sm:$0xff]   ;;  %v1203_v10 = vld [vmem:[%s1533_s2 + $0x2c] ss:$16 sps:$4 sm:$0xff]  }
  0x2b   : > { %584 = vmatpush1.bf16.msra.mxu1 %v1143_v23  ;;  %v1195_v9 = vld [vmem:[%s1533_s2 + $0x48] ss:$16 sps:$4 sm:$0xff]   ;;  %v1209_v12 = vld [vmem:[%s1533_s2 + $0xc] ss:$16 sps:$4 sm:$0xff]  }
  0x2c   : > { %585 = vmatprep.subr.bf16.mxu1 %v1147_v25  ;;  %v1201_v11 = vld [vmem:[%s1533_s2 + $0x28] ss:$16 sps:$4 sm:$0xff]  }
  0x2d   : > { %1087 = vmatpush3.bf16.msra.mxu0 %v1112_v18  ;;  %v1207_v13 = vld [vmem:[%s1533_s2 + $0x8] ss:$16 sps:$4 sm:$0xff]  }
  0x2e   : > { %1088 = vmatprep.subr.bf16.mxu0 %v1235_v2  ;;  %v1204_v2 = vld [vmem:[%s1533_s2] ss:$16 sps:$4 sm:$0xff]  }
  0x2f   : > { %586 = vmatpush1.bf16.msra.mxu1 %v1149_v28 }
  0x30   : > { %587 = vmatprep.subr.bf16.mxu1 %v1153_v29 }
  0x31   : > { %1089 = vmatpush3.bf16.msra.mxu0 %v1113_v21 }
  0x32   : > { %614 = vmatprep.subr.bf16.mxu0 %v1122_v22 }
  0x33   : > { %588 = vmatpush1.bf16.msra.mxu1 %v1155_v32 }
  0x34   : > { %1091 = vmatmul.mubr.bf16.vlgmr.msra.gmra.mxu0 %v239_v24  ;;  %815 = vmatprep.subr.bf16.mxu1 %v1164_v34 }
  0x35   : > { %615 = vmatpush1.bf16.msra.mxu0 %v1120_v26  ;;  %646 = vmatprep.mubr.bf16.mxu0 %v1237_v4 }
  0x36   : > { %616 = vmatprep.subr.bf16.mxu0 %v1128_v27  ;;  %606 = vmatmul.mubr.bf16.vlgmr.msra.gmra.mxu1 %v412_v37  ;;  %v898_v27 = vlaneseq }
  0x37   : > { %816 = vmatpush1.bf16.msra.mxu1 %v1162_v38  ;;  %847 = vmatprep.mubr.bf16.mxu1 %v1237_v4 }
  0x38   : > { %817 = vmatprep.subr.bf16.mxu1 %v1170_v39  ;;  %v899_v28 = vshrl.u32 %v898_v27, 7 }
  0x39   : > { %617 = vmatpush1.bf16.msra.mxu0 %v1126_v30  ;;  %v410_v30 = vld [vmem:[%s1535_s4] sm:$0xf] }
  0x3a   : > { %618 = vmatprep.subr.bf16.mxu0 %v1134_v31  ;;  %v900_v29 = vsub.s32 0, %v899_v28  ;;  %v904_v31 = vsub.s32 1, %v899_v28 }
  0x3b   : > { %818 = vmatpush1.bf16.msra.mxu1 %v1168_v42 }
  0x3c   : > { %819 = vmatprep.subr.bf16.mxu1 %v1176_v43  ;;  %v901_v32 = vrot.slane %v410_v30, %v900_v29 }
  0x3d   : > { %619 = vmatpush1.bf16.msra.mxu0 %v1132_v35 }
  0x3e   : > { %620 = vmatprep.subr.bf16.mxu0 %v1140_v36  ;;  %v905_v36 = vrot.slane %v410_v30, %v904_v31 }
  0x3f   : > { %820 = vmatpush1.bf16.msra.mxu1 %v1174_v46 }
  0x40   : > { %821 = vmatprep.subr.bf16.mxu1 %v1182_v47 }
  0x41   : > { %621 = vmatpush1.bf16.msra.mxu0 %v1138_v40 }
  0x42   : > { %622 = vmatprep.subr.bf16.mxu0 %v1146_v41 }
  0x43   : > { %822 = vmatpush1.bf16.msra.mxu1 %v1180_v50 }
  0x44   : > { %823 = vmatprep.subr.bf16.mxu1 %v1188_v51  ;;  %v908_v51 = vsub.s32 2, %v899_v28 }
  0x45   : > { %623 = vmatpush1.bf16.msra.mxu0 %v1144_v44 }
  0x46   : > { %624 = vmatprep.subr.bf16.mxu0 %v1152_v45  ;;  %v912_v45 = vsub.s32 3, %v899_v28 }
  0x47   : > { %824 = vmatpush1.bf16.msra.mxu1 %v1186_v54  ;;  %v909_v54 = vrot.slane %v410_v30, %v908_v51 }
  0x48   : > { %825 = vmatprep.subr.bf16.mxu1 %v1194_v55  ;;  %v913_v50 = vrot.slane %v410_v30, %v912_v45 }
  0x49   : > { %625 = vmatpush1.bf16.msra.mxu0 %v1150_v48 }
  0x4a   : > { %626 = vmatprep.subr.bf16.mxu0 %v1158_v49 }
  0x4b   : > { %826 = vmatpush1.bf16.msra.mxu1 %v1192_v58 }
  0x4c   : > { %827 = vmatprep.subr.bf16.mxu1 %v1200_v59 }
  0x4d   : > { %627 = vmatpush1.bf16.msra.mxu0 %v1156_v52 }
  0x4e   : > { %628 = vmatprep.subr.bf16.mxu0 %v1161_v53 }
  0x4f   : > { %828 = vmatpush1.bf16.msra.mxu1 %v1198_v62 }
  0x50   : > { %829 = vmatprep.subr.bf16.mxu1 %v1206_v63  ;;  %v345_v63 = vld [vmem:[%s1537_s6] sm:$0xff] }
  0x51   : > { %629 = vmatpush1.bf16.msra.mxu0 %v1159_v56 }
  0x52   : > { %856 = vmatprep.subr.bf16.mxu0 %v1167_v57 }
  0x53   : > { %830 = vmatpush1.bf16.msra.mxu1 %v1204_v2 }
  0x54   : > { %647 = vmatmul.mubr.bf16.vlgmr.msra.gmra.mxu0 %v412_v37 }
  0x55   : > { %857 = vmatpush1.bf16.msra.mxu0 %v1165_v60  ;;  %888 = vmatprep.mubr.bf16.mxu0 %v1237_v4  ;;  %v1185_v4 = vld [vmem:[%s1533_s2 + $0x8c] ss:$16 sps:$4 sm:$0xff]  }
  0x56   : > { %858 = vmatprep.subr.bf16.mxu0 %v1173_v61 }
  0x59   : > { %859 = vmatpush1.bf16.msra.mxu0 %v1171_v0 }
  0x5a   : > { %860 = vmatprep.subr.bf16.mxu0 %v1179_v1 }
  0x5d   : > { %861 = vmatpush1.bf16.msra.mxu0 %v1177_v3 }
  0x5e   : > { %862 = vmatprep.subr.bf16.mxu0 %v1185_v4 }
  0x61   : > { %863 = vmatpush1.bf16.msra.mxu0 %v1183_v5 }
  0x62   : > { %864 = vmatprep.subr.bf16.mxu0 %v1191_v6 }
  0x65   : > { %865 = vmatpush1.bf16.msra.mxu0 %v1189_v7 }
  0x66   : > { %866 = vmatprep.subr.bf16.mxu0 %v1197_v8 }
  0x69   : > { %867 = vmatpush1.bf16.msra.mxu0 %v1195_v9 }
  0x6a   : > { %868 = vmatprep.subr.bf16.mxu0 %v1203_v10 }
  0x6d   : > { %869 = vmatpush1.bf16.msra.mxu0 %v1201_v11 }
  0x6e   : > { %870 = vmatprep.subr.bf16.mxu0 %v1209_v12 }
  0x71   : > { %871 = vmatpush1.bf16.msra.mxu0 %v1207_v13 }
  0xf4   : > { %v338_v14 = vpop.f32.mrf.mxu0 }
  0xf5   : > { %v411_v15 = vpack.c.bf16 %v338_v14, %v338_v14 }
  0xf6   : > { %v1092_v16 = vpop.f32.mrf.mxu0  ;;  %v607_v19 = vpop.f32.mrf.mxu1 }
  0xf7   : > { %848 = vmatmul.mubr.bf16.vlgmr.msra.gmra.mxu1 %v411_v15  ;;  %889 = vmatmul.mubr.bf16.vlgmr.msra.gmra.mxu0 %v411_v15 }
  0xf8   : > { %v341_v17 = vpop.f32.mrf.mxu0  ;;  %v609_v20 = vpop.f32.mrf.mxu1 }
  0xfa   : > { %v1093_v18 = vpop.f32.mrf.mxu0  ;;  %v611_v21 = vpop.f32.mrf.mxu1 }
  0xfc   : > { %v612_v22 = vpop.f32.mrf.mxu1 }
 0x114   : > { %v648_v23 = vpop.f32.mrf.mxu0 }
 0x116   : > { %v650_v24 = vpop.f32.mrf.mxu0 }
 0x118   : > { %v652_v25 = vpop.f32.mrf.mxu0 }
 0x11a   : > { %v653_v26 = vpop.f32.mrf.mxu0 }
 0x1b7   : > { %v849_v33 = vpop.f32.mrf.mxu1  ;;  %v890_v34 = vpop.f32.mrf.mxu0 }
 0x1b8   : > { %v850_v35 = vadd.f32 %v849_v33, %v607_v19  ;;  %v891_v53 = vadd.f32 %v890_v34, %v648_v23 }
 0x1b9   : > { %v851_v37 = vpop.f32.mrf.mxu1  ;;  %v892_v38 = vpop.f32.mrf.mxu0 }
 0x1ba   : > { %v918_v39 = vadd.f32 %v901_v32, %v850_v35  ;;  %v852_v40 = vadd.f32 %v851_v37, %v609_v20  ;;  %v893_v49 = vadd.f32 %v892_v38, %v650_v24  ;;  %v920_v57 = vadd.f32 %v909_v54, %v891_v53 }
 0x1bb   : > { %v853_v41 = vpop.f32.mrf.mxu1  ;;  %v894_v42 = vpop.f32.mrf.mxu0 }
 0x1bc   : > { %v1060_v43 = vmul.f32 -1.442695, %v918_v39  ;;  %v919_v44 = vadd.f32 %v905_v36, %v852_v40  ;;  %v921_v52 = vadd.f32 %v913_v50, %v893_v49 }
 0x1bd   : > { %v854_v46 = vpop.f32.mrf.mxu1  ;;  %v895_v47 = vpop.f32.mrf.mxu0 }
 0x1be   : > { %1210 = vpow2.f32 %v1060_v43  ;;  %v1061_v48 = vmul.f32 -1.442695, %v919_v44  ;;  %v1062_v55 = vmul.f32 -1.442695, %v921_v52 }
 0x1c0   : > { %1212 = vpow2.f32 %v1061_v48 }
 0x1c1   : > { %1214 = vpow2.f32 %v1062_v55 }
 0x1cb   : > { %v1211_v56 = vpop.eup %1210 }
 0x1cc   : > { %v925_v58 = vadd.f32 1.0, %v1211_v56 }
 0x1cd   : > { %v1213_v59 = vpop.eup %1212 }
 0x1ce   : > { %1216 = vrcp.f32 %v925_v58  ;;  %v931_v60 = vadd.f32 1.0, %v1213_v59  ;;  %v1215_v61 = vpop.eup %1214 }
 0x1cf   : > { %1218 = vtanh.f32 %v920_v57  ;;  %v938_v2 = vadd.f32 1.0, %v1215_v61 }
 0x1d0   : > { %1220 = vrcp.f32 %v931_v60 }
 0x1d1   : > { %1222 = vrcp.f32 %v938_v2 }
 0x1db   : > { %v1217_v62 = vpop.eup %1216 }
 0x1dc   : > { %v1219_v0 = vpop.eup %1218 }
 0x1dd   : > { %v1221_v1 = vpop.eup %1220  ;;  %v942_v3 = vmul.f32 %v1219_v0, %v1217_v62 }
 0x1de   : > { %v941_v4 = vmul.f32 %v1221_v1, %v345_v63  ;;  %v1223_v6 = vpop.eup %1222 }
 0x1e0   : > { %v943_v5 = vadd.f32 %v942_v3, %v941_v4 }
 0x1e2   : > { %1224 = vtanh.f32 %v943_v5  ;;  %947 = vst [vmem:[%s1537_s6] sm:$0xff] %v943_v5 }
 0x1ef   : > { %v1225_v7 = vpop.eup %1224 }
 0x1f0   : > { %v945_v8 = vmul.f32 %v1225_v7, %v1223_v6 }
 0x1f2   : > { %946 = vst [vmem:[%s1536_s5] sm:$0xff] %v945_v8 }
 0x1f3 PF: > { %s17_s21 = sadd.s32 1, %s1232_s21  }
 0x1f4   : > { %p14_p5 = scmp.ge.s32.totalorder %s17_s21, 10  }
 0x1f6   :  { %16 = sbr.rel (!%p14_p5) target bundleno = 1 (0x1), region = 78 }

</bundles_post_ra>
